<compile_context>
chip_gen: v7x
topology: tpu7x:2x2x1
jax: 0.10.0
libtpu: 0.0.40
codegen_flags: <defaults>
</compile_context>

<pallas_src>
import jax
import jax.numpy as jnp
from jax.experimental import pallas as pl
from jax.experimental.pallas import tpu as pltpu

NEG_SLOPE = 0.1  # LeakyReLU slope used by Conv{1,2}dNormRelu


def _leaky(x):
    return jnp.where(x >= 0, x, NEG_SLOPE * x)


def _const_spec(shape):
    nd = len(shape)
    return pl.BlockSpec(tuple(shape), lambda *g: (0,) * nd)


def _pick_tile(total, preferred=128):
    # Demo-sized picker. Production: sweep 256-1024 (v6e/v7x) / 128-512 (v5e) against the
    # per-generation VMEM budget; keep tiles multiples of 128 for unmasked lane-dense vst.
    if total % preferred == 0:
        return preferred
    return total  # fall back to full extent (keeps the (8,128) BlockSpec rule)


def _compiler_params(dims):
    # Per-generation scoped-VMEM raise: defaults are only 16/32/32 MiB (v5e/v6e/v7x);
    # use ~3/4 of physical capped at 96 MiB -> 96 MiB on v5e/v6e, 48 MiB on v7x.
    try:
        cap = pltpu.get_tpu_info().vmem_capacity_bytes
        vmem_limit = min((cap * 3) // 4, 96 * 1024 * 1024)
    except Exception:  # pragma: no cover - conservative fallback
        vmem_limit = 48 * 1024 * 1024
    return pltpu.CompilerParams(dimension_semantics=dims,
                                vmem_limit_bytes=int(vmem_limit))


# ----------------------------------------------------------------------------------
# Kernel A: FusionAwareInterp + SKFusion(fuse2d) align convs, tiled over HW.
# Emits a, b (aligned branches) per HW tile + per-batch softmax gate at the last tile.
# ----------------------------------------------------------------------------------
def _make_interp_fuse2d_kernel(hw_total):
    def kernel(uvt_ref, uvf_ref, grid_ref, f2d_ref,
               w1_ref, w2_ref, wo_ref, wa_ref, wb_ref, wmid_ref, wo12_ref, bias_ref,
               a_ref, b_ref, g_ref, pooled):
        t = pl.program_id(1)

        @pl.when(t == 0)
        def _():
            pooled[...] = jnp.zeros_like(pooled)

        C3d = w2_ref.shape[0]
        C2d = wa_ref.shape[0]

        biases = bias_ref[...]                       # [16 + 2*C3d + 2*C2d, 1]
        b1 = biases[0:16]
        b2 = biases[16:16 + C3d]
        bo = biases[16 + C3d:16 + 2 * C3d]
        ba = biases[16 + 2 * C3d:16 + 2 * C3d + C2d]
        bb = biases[16 + 2 * C3d + C2d:16 + 2 * C3d + 2 * C2d]

        uvt = uvt_ref[0]        # [N, 2]        f32 point pixel coords
        uvf = uvf_ref[0]        # [C3d+2, N]    bf16 cat([feat_3d, uv], channel)
        grid = grid_ref[...]    # [2, HW_T]     f32 pixel coords of this HW tile
        f2d = f2d_ref[0]        # [C2d, HW_T]   f32

        gx = grid[0:1, :]
        gy = grid[1:2, :]
        ux = uvt[:, 0:1]
        uy = uvt[:, 1:2]

        # Squared distances for this HW tile only; the 1-NN is per column, so HW tiling
        # needs no cross-tile reduction.  Elementwise math stays f32 (v5e has no bf16 VPU).
        dx = ux - gx
        dy = uy - gy
        d = dx * dx + dy * dy                          # [N, HW_T]
        dmin = jnp.min(d, axis=0, keepdims=True)       # [1, HW_T]
        # TODO(synk): exact distance ties would double-count in the one-hot gather; they are
        #             measure-zero for real-valued uv, so the float-iota tie-break was dropped.
        onehot = (d == dmin).astype(jnp.bfloat16)      # exact 0/1 in bf16

        # Single bf16 MXU gather of [feat_3d; uv] at the 1-NN (f32 accumulation).
        # uv rows incur bf16 rounding (<0.5% of coord magnitude); acceptable per review.
        knn = jnp.dot(uvf, onehot, preferred_element_type=jnp.float32)   # [C3d+2, HW_T]
        knn_f = knn[0:C3d, :]
        off_x = knn[C3d:C3d + 1, :] - gx
        off_y = knn[C3d + 1:C3d + 2, :] - gy
        off_norm = jnp.sqrt(dmin)                      # |nearest uv - grid| exactly

        # score_net layer 1 (Cin=3) as VPU broadcast-FMAs (no tiny-K matmul).
        w1 = w1_ref[...]                               # [16, 3]
        h = _leaky(w1[:, 0:1] * off_x + w1[:, 1:2] * off_y + w1[:, 2:3] * off_norm + b1)
        score = jax.nn.sigmoid(jnp.dot(w2_ref[...], h, preferred_element_type=jnp.float32) + b2)
        interp = _leaky(jnp.dot(wo_ref[...], score * knn_f,
                                preferred_element_type=jnp.float32) + bo)   # [C3d, HW_T]

        # SKFusion align convs; the global gate is applied later by the blend kernel.
        a = _leaky(jnp.dot(wa_ref[...], f2d, preferred_element_type=jnp.float32) + ba)
        bfeat = _leaky(jnp.dot(wb_ref[...], interp, preferred_element_type=jnp.float32) + bb)
        a_ref[0] = a                                    # lane-dense [C2d, HW_T] store
        b_ref[0] = bfeat
        pooled[...] += jnp.sum(a + bfeat, axis=1, keepdims=True)

        @pl.when(t == pl.num_programs(1) - 1)
        def _():
            mean = pooled[...] * (1.0 / hw_total)
            mid = jnp.maximum(jnp.dot(wmid_ref[...], mean,
                                      preferred_element_type=jnp.float32), 0.0)
            g = jax.nn.sigmoid(jnp.dot(wo12_ref[...], mid,
                                       preferred_element_type=jnp.float32))   # [2*C2d, 1]
            g1 = g[0:C2d]
            g2 = g[C2d:2 * C2d]
            m = jnp.maximum(g1, g2)
            e1 = jnp.exp(g1 - m)
            e2 = jnp.exp(g2 - m)
            inv = pl.reciprocal(e1 + e2, approx=True)
            g_ref[0] = jnp.concatenate([e1 * inv, e2 * inv], axis=0)           # softmax pair

    return kernel


# ----------------------------------------------------------------------------------
# Kernel B: bilinear grid_sample (HW = contraction axis) + mlps3d + SKFusion(fuse3d)
# align convs, tiled over (N, HW).  Emits a, b per N tile + per-batch gate.
# ----------------------------------------------------------------------------------
def _make_sample_fuse3d_kernel(H, W, hw_tile, n_total):
    def kernel(f2d_ref, uv_ref, f3d_ref,
               wm_ref, wa_ref, wb_ref, wmid_ref, wo12_ref, bias_ref,
               a_ref, b_ref, g_ref, samp_acc, pooled):
        n_i = pl.program_id(1)
        hw_i = pl.program_id(2)
        n_last = pl.num_programs(1) - 1
        hw_last = pl.num_programs(2) - 1

        @pl.when(hw_i == 0)
        def _():
            samp_acc[...] = jnp.zeros_like(samp_acc)

        @pl.when((n_i == 0) & (hw_i == 0))
        def _():
            pooled[...] = jnp.zeros_like(pooled)

        C2d = wm_ref.shape[0]
        C3d = wa_ref.shape[0]
        n_tile = samp_acc.shape[1]

        # bilinear weights at raw pixel coords (== grid_sample_wrapper normalize +
        # F.grid_sample(align_corners=True), zeros outside the image)
        uv = uv_ref[0]                      # [2, N_T] f32
        x = uv[0:1, :]
        y = uv[1:2, :]
        x0 = jnp.floor(x)
        y0 = jnp.floor(y)
        x1 = x0 + 1.0
        y1 = y0 + 1.0
        wx1 = x - x0
        wx0 = 1.0 - wx1
        wy1 = y - y0
        wy0 = 1.0 - wy1

        # Global flat pixel index covered by this HW tile (int32 compare, no big casts).
        rows = hw_i * hw_tile + jax.lax.broadcasted_iota(jnp.int32, (hw_tile, n_tile), 0)

        def corner(xi, yi, wgt):
            valid = ((xi >= 0.0) & (xi <= W - 1.0) &
                     (yi >= 0.0) & (yi <= H - 1.0)).astype(jnp.float32)
            flat = (yi * W + xi).astype(jnp.int32)      # [1, N_T]; invalid corners zeroed below
            return jnp.where(rows == flat, wgt * valid, 0.0)

        # TODO(synk): pltpu.roll-derived corner masks are cheaper on the VALU but break at
        #             HW-tile boundaries once HW is tiled, so keep 4 compares and accumulate
        #             sequentially (only ~2 live [HW_T, N_T] temporaries).
        wmat = corner(x0, y0, wx0 * wy0)
        wmat = wmat + corner(x1, y0, wx1 * wy0)
        wmat = wmat + corner(x0, y1, wx0 * wy1)
        wmat = wmat + corner(x1, y1, wx1 * wy1)          # [HW_T, N_T]

        # HW is the contraction axis: accumulate the bilinear sample chunk-by-chunk (bf16 MXU).
        samp_acc[...] += jnp.dot(f2d_ref[0], wmat.astype(jnp.bfloat16),
                                 preferred_element_type=jnp.float32)        # [C2d, N_T]

        @pl.when(hw_i == hw_last)
        def _():
            biases = bias_ref[...]                      # [C2d + 2*C3d, 1]
            bm = biases[0:C2d]
            ba = biases[C2d:C2d + C3d]
            bb = biases[C2d + C3d:C2d + 2 * C3d]
            # mlps3d: Conv1d(C2d -> C2d) + leaky_relu on the completed sample
            s = _leaky(jnp.dot(wm_ref[...], samp_acc[...],
                               preferred_element_type=jnp.float32) + bm)
            # SKFusion (ncm) aligns; TODO(synk): reference 'ncm' branch uses nn.Conv2d on a 3D
            # tensor and a mask-requiring pool that errors for mask=None; we implement the
            # intended pointwise-conv + unmasked mean-over-M semantics (uv_mask unused).
            a = _leaky(jnp.dot(wa_ref[...], s, preferred_element_type=jnp.float32) + ba)
            bfeat = _leaky(jnp.dot(wb_ref[...], f3d_ref[0],
                                   preferred_element_type=jnp.float32) + bb)
            a_ref[0] = a                                 # lane-dense [C3d, N_T] store
            b_ref[0] = bfeat
            pooled[...] += jnp.sum(a + bfeat, axis=1, keepdims=True)

        @pl.when((n_i == n_last) & (hw_i == hw_last))
        def _():
            mean = pooled[...] * (1.0 / n_total)
            mid = jnp.maximum(jnp.dot(wmid_ref[...], mean,
                                      preferred_element_type=jnp.float32), 0.0)
            g = jax.nn.sigmoid(jnp.dot(wo12_ref[...], mid,
                                       preferred_element_type=jnp.float32))   # [2*C3d, 1]
            g1 = g[0:C3d]
            g2 = g[C3d:2 * C3d]
            m = jnp.maximum(g1, g2)
            e1 = jnp.exp(g1 - m)
            e2 = jnp.exp(g2 - m)
            inv = pl.reciprocal(e1 + e2, approx=True)
            g_ref[0] = jnp.concatenate([e1 * inv, e2 * inv], axis=0)

    return kernel


# ----------------------------------------------------------------------------------
# Tiny memory-bound blend kernel: out = a * gate[:C] + b * gate[C:2C]  (SK epilogue)
# ----------------------------------------------------------------------------------
def _blend_kernel(a_ref, b_ref, g_ref, out_ref):
    C = a_ref.shape[1]
    g = g_ref[0]                                        # [2C, 1]
    out_ref[0] = a_ref[0] * g[0:C] + b_ref[0] * g[C:2 * C]


def _sk_blend(a, b, gates, tile):
    B, C, L = a.shape
    T = L // tile
    return pl.pallas_call(
        _blend_kernel,
        out_shape=jax.ShapeDtypeStruct((B, C, L), jnp.float32),
        grid_spec=pltpu.PrefetchScalarGridSpec(
            num_scalar_prefetch=0, grid=(B, T),
            in_specs=[pl.BlockSpec((1, C, tile), lambda bi, t: (bi, 0, t)),
                      pl.BlockSpec((1, C, tile), lambda bi, t: (bi, 0, t)),
                      pl.BlockSpec((1, 2 * C, 1), lambda bi, t: (bi, 0, 0))],
            out_specs=pl.BlockSpec((1, C, tile), lambda bi, t: (bi, 0, t)),
        ),
        # fully parallel grid -> both v7x TensorCores stay busy even when B == 1
        compiler_params=_compiler_params(("parallel", "parallel")),
    )(a, b, gates)


# ----------------------------------------------------------------------------------
# Stage wrappers
# ----------------------------------------------------------------------------------
def interp_fuse2d_stage(uv_t, uvf_bf16, grid_cn, f2d_cn, params, hw_tile):
    B, N, _ = uv_t.shape
    C3d = uvf_bf16.shape[1] - 2
    C2d, HW = f2d_cn.shape[1], f2d_cn.shape[2]
    T = HW // hw_tile
    pi, pf = params['interp'], params['fuse2d']

    # even/odd fc_out rows stacked so both gates come from one matmul
    wo12 = jnp.concatenate([pf['wout'][0::2], pf['wout'][1::2]], axis=0)    # [2*C2d, Cr]
    biases = jnp.concatenate([pi['score_b1'], pi['score_b2'], pi['out_b'],
                              pf['ba'], pf['bb']], axis=0)                  # [16+2*C3d+2*C2d, 1]

    kernel = _make_interp_fuse2d_kernel(HW)
    return pl.pallas_call(
        kernel,
        out_shape=(jax.ShapeDtypeStruct((B, C2d, HW), jnp.float32),
                   jax.ShapeDtypeStruct((B, C2d, HW), jnp.float32),
                   jax.ShapeDtypeStruct((B, 2 * C2d, 1), jnp.float32)),
        grid_spec=pltpu.PrefetchScalarGridSpec(
            num_scalar_prefetch=0, grid=(B, T),
            in_specs=[
                pl.BlockSpec((1, N, 2), lambda b, t: (b, 0, 0)),
                pl.BlockSpec((1, C3d + 2, N), lambda b, t: (b, 0, 0)),
                pl.BlockSpec((2, hw_tile), lambda b, t: (0, t)),
                pl.BlockSpec((1, C2d, hw_tile), lambda b, t: (b, 0, t)),
                _const_spec(pi['score_w1'].shape),
                _const_spec(pi['score_w2'].shape),
                _const_spec(pi['out_w'].shape),
                _const_spec(pf['wa'].shape),
                _const_spec(pf['wb'].shape),
                _const_spec(pf['wmid'].shape),
                _const_spec(wo12.shape),
                _const_spec(biases.shape),
            ],
            out_specs=(
                pl.BlockSpec((1, C2d, hw_tile), lambda b, t: (b, 0, t)),
                pl.BlockSpec((1, C2d, hw_tile), lambda b, t: (b, 0, t)),
                pl.BlockSpec((1, 2 * C2d, 1), lambda b, t: (b, 0, 0)),
            ),
            scratch_shapes=[pltpu.VMEM((C2d, 1), jnp.float32)],
        ),
        compiler_params=_compiler_params(("parallel", "arbitrary")),
    )(uv_t, uvf_bf16, grid_cn, f2d_cn,
      pi['score_w1'], pi['score_w2'], pi['out_w'],
      pf['wa'], pf['wb'], pf['wmid'], wo12, biases)


def sample_fuse3d_stage(f2d_bf16, uv_cn, f3d_cn, params, H, W, hw_tile, n_tile):
    B, C2d, HW = f2d_bf16.shape
    C3d = f3d_cn.shape[1]
    N = uv_cn.shape[2]
    Tn, Thw = N // n_tile, HW // hw_tile
    pm, pf = params['mlps3d'], params['fuse3d']

    wo12 = jnp.concatenate([pf['wout'][0::2], pf['wout'][1::2]], axis=0)    # [2*C3d, Cr]
    biases = jnp.concatenate([pm['b'], pf['ba'], pf['bb']], axis=0)         # [C2d+2*C3d, 1]

    kernel = _make_sample_fuse3d_kernel(H, W, hw_tile, N)
    return pl.pallas_call(
        kernel,
        out_shape=(jax.ShapeDtypeStruct((B, C3d, N), jnp.float32),
                   jax.ShapeDtypeStruct((B, C3d, N), jnp.float32),
                   jax.ShapeDtypeStruct((B, 2 * C3d, 1), jnp.float32)),
        grid_spec=pltpu.PrefetchScalarGridSpec(
            num_scalar_prefetch=0, grid=(B, Tn, Thw),
            in_specs=[
                pl.BlockSpec((1, C2d, hw_tile), lambda b, n, k: (b, 0, k)),
                pl.BlockSpec((1, 2, n_tile), lambda b, n, k: (b, 0, n)),
                pl.BlockSpec((1, C3d, n_tile), lambda b, n, k: (b, 0, n)),
                _const_spec(pm['w'].shape),
                _const_spec(pf['wa'].shape),
                _const_spec(pf['wb'].shape),
                _const_spec(pf['wmid'].shape),
                _const_spec(wo12.shape),
                _const_spec(biases.shape),
            ],
            out_specs=(
                pl.BlockSpec((1, C3d, n_tile), lambda b, n, k: (b, 0, n)),
                pl.BlockSpec((1, C3d, n_tile), lambda b, n, k: (b, 0, n)),
                pl.BlockSpec((1, 2 * C3d, 1), lambda b, n, k: (b, 0, 0)),
            ),
            scratch_shapes=[pltpu.VMEM((C2d, n_tile), jnp.float32),
                            pltpu.VMEM((C3d, 1), jnp.float32)],
        ),
        # N and HW axes are 'arbitrary' (pooled / sample accumulation); B is 'parallel'.
        compiler_params=_compiler_params(("parallel", "arbitrary", "arbitrary")),
    )(f2d_bf16, uv_cn, f3d_cn, pm['w'], pf['wa'], pf['wb'], pf['wmid'], wo12, biases)


# ----------------------------------------------------------------------------------
# Parameter init (PyTorch layout: Conv/Linear weight = [Cout, Cin]; bias as [Cout, 1])
# ----------------------------------------------------------------------------------
def init_params(key, c2d, c3d):
    ks = jax.random.split(key, 20)

    def w(k, shape):
        return jax.random.normal(k, shape, jnp.float32) * 0.1

    return {
        'interp': dict(
            score_w1=w(ks[0], (16, 3)),   score_b1=w(ks[1], (16, 1)),
            score_w2=w(ks[2], (c3d, 16)), score_b2=w(ks[3], (c3d, 1)),
            out_w=w(ks[4], (c3d, c3d)),   out_b=w(ks[5], (c3d, 1)),
        ),
        'mlps3d': dict(w=w(ks[6], (c2d, c2d)), b=w(ks[7], (c2d, 1))),
        'fuse2d': dict(
            wa=w(ks[8], (c2d, c2d)),  ba=w(ks[9], (c2d, 1)),
            wb=w(ks[10], (c2d, c3d)), bb=w(ks[11], (c2d, 1)),
            wmid=w(ks[12], (c2d // 2, c2d)),
            wout=w(ks[13], (2 * c2d, c2d // 2)),
        ),
        'fuse3d': dict(
            wa=w(ks[14], (c3d, c2d)), ba=w(ks[15], (c3d, 1)),
            wb=w(ks[16], (c3d, c3d)), bb=w(ks[17], (c3d, 1)),
            wmid=w(ks[18], (c3d // 2, c3d)),
            wout=w(ks[19], (2 * c3d, c3d // 2)),
        ),
    }


# ----------------------------------------------------------------------------------
# GlobalFuserS forward
# ----------------------------------------------------------------------------------
def global_fuser_s(uv, uv_mask, feat_2d, feat_3d, params):
    # uv: [B, 2, N] (x, y) pixel coords; uv_mask: [B, N] (unused by this forward path)
    # feat_2d: [B, C2d, H, W] ; feat_3d: [B, C3d, N]
    del uv_mask  # matches the PyTorch forward: the mask never reaches SKFusion here
    B, C2d, H, W = feat_2d.shape
    C3d = feat_3d.shape[1]
    HW = H * W
    N = uv.shape[2]

    hw_tile = _pick_tile(HW)
    n_tile = _pick_tile(N)

    f2d_cn = feat_2d.reshape(B, C2d, HW).astype(jnp.float32)        # [B, C2d, HW]
    f3d_cn = feat_3d.astype(jnp.float32)                            # [B, C3d, N]
    uv_cn = uv.astype(jnp.float32)                                  # [B, 2, N]
    uv_t = jnp.transpose(uv_cn, (0, 2, 1))                          # [B, N, 2]  (tiny)
    # combined gather feed in bf16 (MXU operand + halved HBM traffic)
    uvf_bf16 = jnp.concatenate([f3d_cn, uv_cn], axis=1).astype(jnp.bfloat16)   # [B, C3d+2, N]
    f2d_bf16 = f2d_cn.astype(jnp.bfloat16)                          # sample-matmul operand

    # mesh_grid (channel-first): grid_cn[:, h*W + w] = (x=w, y=h)
    ys, xs = jnp.meshgrid(jnp.arange(H, dtype=jnp.float32),
                          jnp.arange(W, dtype=jnp.float32), indexing='ij')
    grid_cn = jnp.stack([xs.reshape(-1), ys.reshape(-1)], axis=0)   # [2, HW]

    # FusionAwareInterp + fuse2d align convs (tiled over HW), then the SK-gate blend
    a2d, b2d, g2d = interp_fuse2d_stage(uv_t, uvf_bf16, grid_cn, f2d_cn, params, hw_tile)
    out2d = _sk_blend(a2d, b2d, g2d, hw_tile).reshape(B, C2d, H, W)

    # grid_sample + mlps3d + fuse3d align convs (tiled over N x HW), then the blend
    a3d, b3d, g3d = sample_fuse3d_stage(f2d_bf16, uv_cn, f3d_cn, params, H, W, hw_tile, n_tile)
    out3d = _sk_blend(a3d, b3d, g3d, n_tile)                        # [B, C3d, N]

    return out2d, out3d


if __name__ == "__main__":
    B, C2D, C3D, H, W, N = 2, 32, 32, 16, 16, 256   # HW=256, N=256 -> tiling exercised (128 tiles)

    key = jax.random.PRNGKey(0)
    k_uvx, k_uvy, k_f2d, k_f3d, k_p = jax.random.split(key, 5)

    uv = jnp.stack([
        jax.random.uniform(k_uvx, (B, N), minval=0.0, maxval=W - 1.0),
        jax.random.uniform(k_uvy, (B, N), minval=0.0, maxval=H - 1.0),
    ], axis=1)                                            # [B, 2, N]
    uv_mask = jnp.ones((B, N), dtype=bool)                # unused by forward
    feat_2d = jax.random.normal(k_f2d, (B, C2D, H, W), jnp.float32)
    feat_3d = jax.random.normal(k_f3d, (B, C3D, N), jnp.float32)
    params = init_params(k_p, C2D, C3D)

    out2d, out3d = global_fuser_s(uv, uv_mask, feat_2d, feat_3d, params)
    jax.block_until_ready((out2d, out3d))

    assert out2d.shape == (B, C2D, H, W)
    assert out3d.shape == (B, C3D, N)
    assert bool(jnp.isfinite(out2d).all()) and bool(jnp.isfinite(out3d).all())
    print("KERNEL_OK")
</pallas_src>

<mosaic_0001>
module attributes {stable_mosaic.version = 11 : i64} {
  func.func @kernel(%arg0: i32, %arg1: i32, %arg2: memref<1x256x2xf32, #tpu.memory_space<vmem>>, %arg3: memref<1x34x256xbf16, #tpu.memory_space<vmem>>, %arg4: memref<2x128xf32, #tpu.memory_space<vmem>>, %arg5: memref<1x32x128xf32, #tpu.memory_space<vmem>>, %arg6: memref<16x3xf32, #tpu.memory_space<vmem>>, %arg7: memref<32x16xf32, #tpu.memory_space<vmem>>, %arg8: memref<32x32xf32, #tpu.memory_space<vmem>>, %arg9: memref<32x32xf32, #tpu.memory_space<vmem>>, %arg10: memref<32x32xf32, #tpu.memory_space<vmem>>, %arg11: memref<16x32xf32, #tpu.memory_space<vmem>>, %arg12: memref<64x16xf32, #tpu.memory_space<vmem>>, %arg13: memref<144x1xf32, #tpu.memory_space<vmem>>, %arg14: memref<1x32x128xf32, #tpu.memory_space<vmem>>, %arg15: memref<1x32x128xf32, #tpu.memory_space<vmem>>, %arg16: memref<1x64x1xf32, #tpu.memory_space<vmem>>, %arg17: memref<32x1xf32, #tpu.memory_space<vmem>>) attributes {dimension_semantics = [#tpu.dimension_semantics<parallel>, #tpu.dimension_semantics<arbitrary>], iteration_bounds = array<i64: 2, 2>, scalar_prefetch = 0 : i64, scratch_operands = 1 : i64, tpu.core_type = #tpu.core_type<tc>, window_params = [{transform_indices = @transform_0, window_bounds = array<i64: 1, 256, 2>}, {transform_indices = @transform_1, window_bounds = array<i64: 1, 34, 256>}, {transform_indices = @transform_2, window_bounds = array<i64: 2, 128>}, {transform_indices = @transform_3, window_bounds = array<i64: 1, 32, 128>}, {pipeline_mode = #tpu.pipeline_mode<synchronous>, transform_indices = @transform_4, window_bounds = array<i64: 16, 3>}, {pipeline_mode = #tpu.pipeline_mode<synchronous>, transform_indices = @transform_5, window_bounds = array<i64: 32, 16>}, {pipeline_mode = #tpu.pipeline_mode<synchronous>, transform_indices = @transform_6, window_bounds = array<i64: 32, 32>}, {pipeline_mode = #tpu.pipeline_mode<synchronous>, transform_indices = @transform_7, window_bounds = array<i64: 32, 32>}, {pipeline_mode = #tpu.pipeline_mode<synchronous>, transform_indices = @transform_8, window_bounds = array<i64: 32, 32>}, {pipeline_mode = #tpu.pipeline_mode<synchronous>, transform_indices = @transform_9, window_bounds = array<i64: 16, 32>}, {pipeline_mode = #tpu.pipeline_mode<synchronous>, transform_indices = @transform_10, window_bounds = array<i64: 64, 16>}, {pipeline_mode = #tpu.pipeline_mode<synchronous>, transform_indices = @transform_11, window_bounds = array<i64: 144, 1>}, {transform_indices = @transform_12, window_bounds = array<i64: 1, 32, 128>}, {transform_indices = @transform_13, window_bounds = array<i64: 1, 32, 128>}, {transform_indices = @transform_14, window_bounds = array<i64: 1, 64, 1>}]} {
    %c0_i32 = arith.constant 0 : i32
    %0 = arith.cmpi eq, %arg1, %c0_i32 : i32
    %1 = arith.extui %0 : i1 to i32
    %c0_i32_0 = arith.constant 0 : i32
    %2 = arith.cmpi ne, %1, %c0_i32_0 : i32
    scf.if %2 {
      %cst_49 = arith.constant 0.000000e+00 : f32
      %117 = vector.broadcast %cst_49 : f32 to vector<32x1xf32>
      %c0_50 = arith.constant 0 : index
      %c0_51 = arith.constant 0 : index
      %118 = vector.load %arg17[%c0_50, %c0_51] : memref<32x1xf32, #tpu.memory_space<vmem>>, vector<32x1xf32>
      tpu.vector_store %arg17[%c0_50, %c0_51], %117 {strides = array<i32>} : memref<32x1xf32, #tpu.memory_space<vmem>>, vector<32x1xf32>,
    } else {
    }
    %c0 = arith.constant 0 : index
    %c0_1 = arith.constant 0 : index
    %3 = vector.load %arg13[%c0, %c0_1] : memref<144x1xf32, #tpu.memory_space<vmem>>, vector<144x1xf32>
    %4 = vector.extract_strided_slice %3 {offsets = [0, 0], sizes = [16, 1], strides = [1, 1]} : vector<144x1xf32> to vector<16x1xf32>
    %5 = vector.extract_strided_slice %3 {offsets = [16, 0], sizes = [32, 1], strides = [1, 1]} : vector<144x1xf32> to vector<32x1xf32>
    %6 = vector.extract_strided_slice %3 {offsets = [48, 0], sizes = [32, 1], strides = [1, 1]} : vector<144x1xf32> to vector<32x1xf32>
    %7 = vector.extract_strided_slice %3 {offsets = [80, 0], sizes = [32, 1], strides = [1, 1]} : vector<144x1xf32> to vector<32x1xf32>
    %8 = vector.extract_strided_slice %3 {offsets = [112, 0], sizes = [32, 1], strides = [1, 1]} : vector<144x1xf32> to vector<32x1xf32>
    %c0_2 = arith.constant 0 : index
    %c0_3 = arith.constant 0 : index
    %c0_4 = arith.constant 0 : index
    %9 = vector.load %arg2[%c0_2, %c0_3, %c0_4] : memref<1x256x2xf32, #tpu.memory_space<vmem>>, vector<1x256x2xf32>
    %10 = vector.shape_cast %9 : vector<1x256x2xf32> to vector<256x2xf32>
    %c0_5 = arith.constant 0 : index
    %c0_6 = arith.constant 0 : index
    %c0_7 = arith.constant 0 : index
    %11 = vector.load %arg3[%c0_5, %c0_6, %c0_7] : memref<1x34x256xbf16, #tpu.memory_space<vmem>>, vector<1x34x256xbf16>
    %12 = vector.shape_cast %11 : vector<1x34x256xbf16> to vector<34x256xbf16>
    %c0_8 = arith.constant 0 : index
    %c0_9 = arith.constant 0 : index
    %13 = vector.load %arg4[%c0_8, %c0_9] : memref<2x128xf32, #tpu.memory_space<vmem>>, vector<2x128xf32>
    %c0_10 = arith.constant 0 : index
    %c0_11 = arith.constant 0 : index
    %c0_12 = arith.constant 0 : index
    %14 = vector.load %arg5[%c0_10, %c0_11, %c0_12] : memref<1x32x128xf32, #tpu.memory_space<vmem>>, vector<1x32x128xf32>
    %15 = vector.shape_cast %14 : vector<1x32x128xf32> to vector<32x128xf32>
    %16 = vector.extract_strided_slice %13 {offsets = [0, 0], sizes = [1, 128], strides = [1, 1]} : vector<2x128xf32> to vector<1x128xf32>
    %17 = vector.extract_strided_slice %13 {offsets = [1, 0], sizes = [1, 128], strides = [1, 1]} : vector<2x128xf32> to vector<1x128xf32>
    %18 = vector.extract_strided_slice %10 {offsets = [0, 0], sizes = [256, 1], strides = [1, 1]} : vector<256x2xf32> to vector<256x1xf32>
    %19 = vector.extract_strided_slice %10 {offsets = [0, 1], sizes = [256, 1], strides = [1, 1]} : vector<256x2xf32> to vector<256x1xf32>
    %20 = vector.broadcast %18 : vector<256x1xf32> to vector<256x128xf32>
    %21 = vector.broadcast %16 : vector<1x128xf32> to vector<256x128xf32>
    %22 = arith.subf %20, %21 : vector<256x128xf32>
    %23 = vector.broadcast %19 : vector<256x1xf32> to vector<256x128xf32>
    %24 = vector.broadcast %17 : vector<1x128xf32> to vector<256x128xf32>
    %25 = arith.subf %23, %24 : vector<256x128xf32>
    %26 = arith.mulf %22, %22 : vector<256x128xf32>
    %27 = arith.mulf %25, %25 : vector<256x128xf32>
    %28 = arith.addf %26, %27 : vector<256x128xf32>
    %cst = arith.constant dense<0x7F800000> : vector<128xf32>
    %29 = vector.multi_reduction <minimumf>, %28, %cst [0] : vector<256x128xf32> to vector<128xf32>
    %30 = vector.shape_cast %29 : vector<128xf32> to vector<1x128xf32>
    %31 = vector.broadcast %30 : vector<1x128xf32> to vector<256x128xf32>
    %32 = arith.cmpf oeq, %28, %31 : vector<256x128xf32>
    %33 = arith.extui %32 : vector<256x128xi1> to vector<256x128xi32>
    %34 = arith.sitofp %33 : vector<256x128xi32> to vector<256x128xf32>
    %35 = arith.truncf %34 : vector<256x128xf32> to vector<256x128xbf16>
    %cst_13 = arith.constant dense<0.000000e+00> : vector<34x128xf32>
    %36 = tpu.matmul %12, %35, %cst_13 {dimension_numbers = #tpu.dot_dimension_numbers<[1], [0], [0], [1], [0, 0, 1, 1], [], []>} : vector<34x256xbf16>, vector<256x128xbf16>, vector<34x128xf32> -> vector<34x128xf32>
    %37 = vector.extract_strided_slice %36 {offsets = [0, 0], sizes = [32, 128], strides = [1, 1]} : vector<34x128xf32> to vector<32x128xf32>
    %38 = vector.extract_strided_slice %36 {offsets = [32, 0], sizes = [1, 128], strides = [1, 1]} : vector<34x128xf32> to vector<1x128xf32>
    %39 = arith.subf %38, %16 : vector<1x128xf32>
    %40 = vector.extract_strided_slice %36 {offsets = [33, 0], sizes = [1, 128], strides = [1, 1]} : vector<34x128xf32> to vector<1x128xf32>
    %41 = arith.subf %40, %17 : vector<1x128xf32>
    %42 = math.sqrt %30 : vector<1x128xf32>
    %c0_14 = arith.constant 0 : index
    %c0_15 = arith.constant 0 : index
    %43 = vector.load %arg6[%c0_14, %c0_15] : memref<16x3xf32, #tpu.memory_space<vmem>>, vector<16x3xf32>
    %44 = vector.extract_strided_slice %43 {offsets = [0, 0], sizes = [16, 1], strides = [1, 1]} : vector<16x3xf32> to vector<16x1xf32>
    %45 = vector.broadcast %44 : vector<16x1xf32> to vector<16x128xf32>
    %46 = vector.broadcast %39 : vector<1x128xf32> to vector<16x128xf32>
    %47 = arith.mulf %45, %46 : vector<16x128xf32>
    %48 = vector.extract_strided_slice %43 {offsets = [0, 1], sizes = [16, 1], strides = [1, 1]} : vector<16x3xf32> to vector<16x1xf32>
    %49 = vector.broadcast %48 : vector<16x1xf32> to vector<16x128xf32>
    %50 = vector.broadcast %41 : vector<1x128xf32> to vector<16x128xf32>
    %51 = arith.mulf %49, %50 : vector<16x128xf32>
    %52 = arith.addf %47, %51 : vector<16x128xf32>
    %53 = vector.extract_strided_slice %43 {offsets = [0, 2], sizes = [16, 1], strides = [1, 1]} : vector<16x3xf32> to vector<16x1xf32>
    %54 = vector.broadcast %53 : vector<16x1xf32> to vector<16x128xf32>
    %55 = vector.broadcast %42 : vector<1x128xf32> to vector<16x128xf32>
    %56 = arith.mulf %54, %55 : vector<16x128xf32>
    %57 = arith.addf %52, %56 : vector<16x128xf32>
    %58 = vector.broadcast %4 : vector<16x1xf32> to vector<16x128xf32>
    %59 = arith.addf %57, %58 : vector<16x128xf32>
    %cst_16 = arith.constant 0.000000e+00 : f32
    %60 = vector.broadcast %cst_16 : f32 to vector<16x128xf32>
    %61 = arith.cmpf oge, %59, %60 : vector<16x128xf32>
    %cst_17 = arith.constant 1.000000e-01 : f32
    %62 = vector.broadcast %cst_17 : f32 to vector<16x128xf32>
    %63 = arith.mulf %62, %59 : vector<16x128xf32>
    %64 = arith.select %61, %59, %63 : vector<16x128xi1>, vector<16x128xf32>
    %c0_18 = arith.constant 0 : index
    %c0_19 = arith.constant 0 : index
    %65 = vector.load %arg7[%c0_18, %c0_19] : memref<32x16xf32, #tpu.memory_space<vmem>>, vector<32x16xf32>
    %cst_20 = arith.constant dense<0.000000e+00> : vector<32x128xf32>
    %66 = tpu.matmul %65, %64, %cst_20 {dimension_numbers = #tpu.dot_dimension_numbers<[1], [0], [0], [1], [0, 0, 1, 1], [], []>} : vector<32x16xf32>, vector<16x128xf32>, vector<32x128xf32> -> vector<32x128xf32>
    %67 = vector.broadcast %5 : vector<32x1xf32> to vector<32x128xf32>
    %68 = arith.addf %66, %67 : vector<32x128xf32>
    %69 = arith.negf %68 : vector<32x128xf32>
    %70 = math.exp %69 : vector<32x128xf32>
    %cst_21 = arith.constant 1.000000e+00 : f32
    %71 = vector.broadcast %cst_21 : f32 to vector<32x128xf32>
    %72 = arith.addf %71, %70 : vector<32x128xf32>
    %73 = arith.divf %71, %72 : vector<32x128xf32>
    %c0_22 = arith.constant 0 : index
    %c0_23 = arith.constant 0 : index
    %74 = vector.load %arg8[%c0_22, %c0_23] : memref<32x32xf32, #tpu.memory_space<vmem>>, vector<32x32xf32>
    %75 = arith.mulf %73, %37 : vector<32x128xf32>
    %cst_24 = arith.constant dense<0.000000e+00> : vector<32x128xf32>
    %76 = tpu.matmul %74, %75, %cst_24 {dimension_numbers = #tpu.dot_dimension_numbers<[1], [0], [0], [1], [0, 0, 1, 1], [], []>} : vector<32x32xf32>, vector<32x128xf32>, vector<32x128xf32> -> vector<32x128xf32>
    %77 = vector.broadcast %6 : vector<32x1xf32> to vector<32x128xf32>
    %78 = arith.addf %76, %77 : vector<32x128xf32>
    %cst_25 = arith.constant 0.000000e+00 : f32
    %79 = vector.broadcast %cst_25 : f32 to vector<32x128xf32>
    %80 = arith.cmpf oge, %78, %79 : vector<32x128xf32>
    %cst_26 = arith.constant 1.000000e-01 : f32
    %81 = vector.broadcast %cst_26 : f32 to vector<32x128xf32>
    %82 = arith.mulf %81, %78 : vector<32x128xf32>
    %83 = arith.select %80, %78, %82 : vector<32x128xi1>, vector<32x128xf32>
    %c0_27 = arith.constant 0 : index
    %c0_28 = arith.constant 0 : index
    %84 = vector.load %arg9[%c0_27, %c0_28] : memref<32x32xf32, #tpu.memory_space<vmem>>, vector<32x32xf32>
    %cst_29 = arith.constant dense<0.000000e+00> : vector<32x128xf32>
    %85 = tpu.matmul %84, %15, %cst_29 {dimension_numbers = #tpu.dot_dimension_numbers<[1], [0], [0], [1], [0, 0, 1, 1], [], []>} : vector<32x32xf32>, vector<32x128xf32>, vector<32x128xf32> -> vector<32x128xf32>
    %86 = vector.broadcast %7 : vector<32x1xf32> to vector<32x128xf32>
    %87 = arith.addf %85, %86 : vector<32x128xf32>
    %cst_30 = arith.constant 0.000000e+00 : f32
    %88 = vector.broadcast %cst_30 : f32 to vector<32x128xf32>
    %89 = arith.cmpf oge, %87, %88 : vector<32x128xf32>
    %cst_31 = arith.constant 1.000000e-01 : f32
    %90 = vector.broadcast %cst_31 : f32 to vector<32x128xf32>
    %91 = arith.mulf %90, %87 : vector<32x128xf32>
    %92 = arith.select %89, %87, %91 : vector<32x128xi1>, vector<32x128xf32>
    %c0_32 = arith.constant 0 : index
    %c0_33 = arith.constant 0 : index
    %93 = vector.load %arg10[%c0_32, %c0_33] : memref<32x32xf32, #tpu.memory_space<vmem>>, vector<32x32xf32>
    %cst_34 = arith.constant dense<0.000000e+00> : vector<32x128xf32>
    %94 = tpu.matmul %93, %83, %cst_34 {dimension_numbers = #tpu.dot_dimension_numbers<[1], [0], [0], [1], [0, 0, 1, 1], [], []>} : vector<32x32xf32>, vector<32x128xf32>, vector<32x128xf32> -> vector<32x128xf32>
    %95 = vector.broadcast %8 : vector<32x1xf32> to vector<32x128xf32>
    %96 = arith.addf %94, %95 : vector<32x128xf32>
    %cst_35 = arith.constant 0.000000e+00 : f32
    %97 = vector.broadcast %cst_35 : f32 to vector<32x128xf32>
    %98 = arith.cmpf oge, %96, %97 : vector<32x128xf32>
    %cst_36 = arith.constant 1.000000e-01 : f32
    %99 = vector.broadcast %cst_36 : f32 to vector<32x128xf32>
    %100 = arith.mulf %99, %96 : vector<32x128xf32>
    %101 = arith.select %98, %96, %100 : vector<32x128xi1>, vector<32x128xf32>
    %c0_37 = arith.constant 0 : index
    %c0_38 = arith.constant 0 : index
    %c0_39 = arith.constant 0 : index
    %102 = vector.load %arg14[%c0_37, %c0_38, %c0_39] : memref<1x32x128xf32, #tpu.memory_space<vmem>>, vector<1x32x128xf32>
    %103 = vector.shape_cast %102 : vector<1x32x128xf32> to vector<32x128xf32>
    %104 = vector.shape_cast %92 : vector<32x128xf32> to vector<1x32x128xf32>
    tpu.vector_store %arg14[%c0_37, %c0_38, %c0_39], %104 {strides = array<i32>} : memref<1x32x128xf32, #tpu.memory_space<vmem>>, vector<1x32x128xf32>,
    %c0_40 = arith.constant 0 : index
    %c0_41 = arith.constant 0 : index
    %c0_42 = arith.constant 0 : index
    %105 = vector.load %arg15[%c0_40, %c0_41, %c0_42] : memref<1x32x128xf32, #tpu.memory_space<vmem>>, vector<1x32x128xf32>
    %106 = vector.shape_cast %105 : vector<1x32x128xf32> to vector<32x128xf32>
    %107 = vector.shape_cast %101 : vector<32x128xf32> to vector<1x32x128xf32>
    tpu.vector_store %arg15[%c0_40, %c0_41, %c0_42], %107 {strides = array<i32>} : memref<1x32x128xf32, #tpu.memory_space<vmem>>, vector<1x32x128xf32>,
    %c0_43 = arith.constant 0 : index
    %c0_44 = arith.constant 0 : index
    %108 = vector.load %arg17[%c0_43, %c0_44] : memref<32x1xf32, #tpu.memory_space<vmem>>, vector<32x1xf32>
    %109 = arith.addf %92, %101 : vector<32x128xf32>
    %cst_45 = arith.constant dense<0.000000e+00> : vector<32xf32>
    %110 = vector.multi_reduction <add>, %109, %cst_45 [1] : vector<32x128xf32> to vector<32xf32>
    %111 = vector.shape_cast %110 : vector<32xf32> to vector<32x1xf32>
    %112 = arith.addf %108, %111 : vector<32x1xf32>
    %c0_46 = arith.constant 0 : index
    %c0_47 = arith.constant 0 : index
    %113 = vector.load %arg17[%c0_46, %c0_47] : memref<32x1xf32, #tpu.memory_space<vmem>>, vector<32x1xf32>
    tpu.vector_store %arg17[%c0_46, %c0_47], %112 {strides = array<i32>} : memref<32x1xf32, #tpu.memory_space<vmem>>, vector<32x1xf32>,
    %c1_i32 = arith.constant 1 : i32
    %114 = arith.cmpi eq, %arg1, %c1_i32 : i32
    %115 = arith.extui %114 : i1 to i32
    %c0_i32_48 = arith.constant 0 : i32
    %116 = arith.cmpi ne, %115, %c0_i32_48 : i32
    scf.if %116 {
      %c0_49 = arith.constant 0 : index
      %c0_50 = arith.constant 0 : index
      %117 = vector.load %arg17[%c0_49, %c0_50] : memref<32x1xf32, #tpu.memory_space<vmem>>, vector<32x1xf32>
      %cst_51 = arith.constant 3.906250e-03 : f32
      %118 = vector.broadcast %cst_51 : f32 to vector<32x1xf32>
      %119 = arith.mulf %117, %118 : vector<32x1xf32>
      %c0_52 = arith.constant 0 : index
      %c0_53 = arith.constant 0 : index
      %120 = vector.load %arg11[%c0_52, %c0_53] : memref<16x32xf32, #tpu.memory_space<vmem>>, vector<16x32xf32>
      %cst_54 = arith.constant dense<0.000000e+00> : vector<16x1xf32>
      %121 = tpu.matmul %120, %119, %cst_54 {dimension_numbers = #tpu.dot_dimension_numbers<[1], [0], [0], [1], [0, 0, 1, 1], [], []>} : vector<16x32xf32>, vector<32x1xf32>, vector<16x1xf32> -> vector<16x1xf32>
      %cst_55 = arith.constant 0.000000e+00 : f32
      %122 = vector.broadcast %cst_55 : f32 to vector<16x1xf32>
      %123 = arith.maximumf %121, %122 : vector<16x1xf32>
      %c0_56 = arith.constant 0 : index
      %c0_57 = arith.constant 0 : index
      %124 = vector.load %arg12[%c0_56, %c0_57] : memref<64x16xf32, #tpu.memory_space<vmem>>, vector<64x16xf32>
      %cst_58 = arith.constant dense<0.000000e+00> : vector<64x1xf32>
      %125 = tpu.matmul %124, %123, %cst_58 {dimension_numbers = #tpu.dot_dimension_numbers<[1], [0], [0], [1], [0, 0, 1, 1], [], []>} : vector<64x16xf32>, vector<16x1xf32>, vector<64x1xf32> -> vector<64x1xf32>
      %126 = arith.negf %125 : vector<64x1xf32>
      %127 = math.exp %126 : vector<64x1xf32>
      %cst_59 = arith.constant 1.000000e+00 : f32
      %128 = vector.broadcast %cst_59 : f32 to vector<64x1xf32>
      %129 = arith.addf %128, %127 : vector<64x1xf32>
      %130 = arith.divf %128, %129 : vector<64x1xf32>
      %131 = vector.extract_strided_slice %130 {offsets = [0, 0], sizes = [32, 1], strides = [1, 1]} : vector<64x1xf32> to vector<32x1xf32>
      %132 = vector.extract_strided_slice %130 {offsets = [32, 0], sizes = [32, 1], strides = [1, 1]} : vector<64x1xf32> to vector<32x1xf32>
      %133 = arith.maximumf %131, %132 : vector<32x1xf32>
      %134 = arith.subf %131, %133 : vector<32x1xf32>
      %135 = math.exp %134 : vector<32x1xf32>
      %136 = arith.subf %132, %133 : vector<32x1xf32>
      %137 = math.exp %136 : vector<32x1xf32>
      %138 = arith.addf %135, %137 : vector<32x1xf32>
      %139 = tpu.reciprocal %138 {approx = true} : vector<32x1xf32> -> vector<32x1xf32>
      %140 = arith.mulf %135, %139 : vector<32x1xf32>
      %141 = arith.mulf %137, %139 : vector<32x1xf32>
      %142 = tpu.concatenate %140, %141 in 0 : vector<32x1xf32>, vector<32x1xf32> -> vector<64x1xf32>
      %c0_60 = arith.constant 0 : index
      %c0_61 = arith.constant 0 : index
      %c0_62 = arith.constant 0 : index
      %143 = vector.load %arg16[%c0_60, %c0_61, %c0_62] : memref<1x64x1xf32, #tpu.memory_space<vmem>>, vector<1x64x1xf32>
      %144 = vector.shape_cast %143 : vector<1x64x1xf32> to vector<64x1xf32>
      %145 = vector.shape_cast %142 : vector<64x1xf32> to vector<1x64x1xf32>
      tpu.vector_store %arg16[%c0_60, %c0_61, %c0_62], %145 {strides = array<i32>} : memref<1x64x1xf32, #tpu.memory_space<vmem>>, vector<1x64x1xf32>,
    } else {
    }
    return
  }
  func.func @transform_0(%arg0: i32, %arg1: i32) -> (i32, i32, i32) {
    %c0_i32 = arith.constant 0 : i32
    %c0_i32_0 = arith.constant 0 : i32
    %c0_i32_1 = arith.constant 0 : i32
    return %arg0, %c0_i32, %c0_i32_0 : i32, i32, i32
  }
  func.func @transform_1(%arg0: i32, %arg1: i32) -> (i32, i32, i32) {
    %c0_i32 = arith.constant 0 : i32
    %c0_i32_0 = arith.constant 0 : i32
    %c0_i32_1 = arith.constant 0 : i32
    return %arg0, %c0_i32, %c0_i32_0 : i32, i32, i32
  }
  func.func @transform_2(%arg0: i32, %arg1: i32) -> (i32, i32) {
    %c0_i32 = arith.constant 0 : i32
    %c0_i32_0 = arith.constant 0 : i32
    return %c0_i32, %arg1 : i32, i32
  }
  func.func @transform_3(%arg0: i32, %arg1: i32) -> (i32, i32, i32) {
    %c0_i32 = arith.constant 0 : i32
    %c0_i32_0 = arith.constant 0 : i32
    return %arg0, %c0_i32, %arg1 : i32, i32, i32
  }
  func.func @transform_4(%arg0: i32, %arg1: i32) -> (i32, i32) {
    %c0_i32 = arith.constant 0 : i32
    %c0_i32_0 = arith.constant 0 : i32
    %c0_i32_1 = arith.constant 0 : i32
    return %c0_i32, %c0_i32_0 : i32, i32
  }
  func.func @transform_5(%arg0: i32, %arg1: i32) -> (i32, i32) {
    %c0_i32 = arith.constant 0 : i32
    %c0_i32_0 = arith.constant 0 : i32
    %c0_i32_1 = arith.constant 0 : i32
    return %c0_i32, %c0_i32_0 : i32, i32
  }
  func.func @transform_6(%arg0: i32, %arg1: i32) -> (i32, i32) {
    %c0_i32 = arith.constant 0 : i32
    %c0_i32_0 = arith.constant 0 : i32
    %c0_i32_1 = arith.constant 0 : i32
    return %c0_i32, %c0_i32_0 : i32, i32
  }
  func.func @transform_7(%arg0: i32, %arg1: i32) -> (i32, i32) {
    %c0_i32 = arith.constant 0 : i32
    %c0_i32_0 = arith.constant 0 : i32
    %c0_i32_1 = arith.constant 0 : i32
    return %c0_i32, %c0_i32_0 : i32, i32
  }
  func.func @transform_8(%arg0: i32, %arg1: i32) -> (i32, i32) {
    %c0_i32 = arith.constant 0 : i32
    %c0_i32_0 = arith.constant 0 : i32
    %c0_i32_1 = arith.constant 0 : i32
    return %c0_i32, %c0_i32_0 : i32, i32
  }
  func.func @transform_9(%arg0: i32, %arg1: i32) -> (i32, i32) {
    %c0_i32 = arith.constant 0 : i32
    %c0_i32_0 = arith.constant 0 : i32
    %c0_i32_1 = arith.constant 0 : i32
    return %c0_i32, %c0_i32_0 : i32, i32
  }
  func.func @transform_10(%arg0: i32, %arg1: i32) -> (i32, i32) {
    %c0_i32 = arith.constant 0 : i32
    %c0_i32_0 = arith.constant 0 : i32
    %c0_i32_1 = arith.constant 0 : i32
    return %c0_i32, %c0_i32_0 : i32, i32
  }
  func.func @transform_11(%arg0: i32, %arg1: i32) -> (i32, i32) {
    %c0_i32 = arith.constant 0 : i32
    %c0_i32_0 = arith.constant 0 : i32
    %c0_i32_1 = arith.constant 0 : i32
    return %c0_i32, %c0_i32_0 : i32, i32
  }
  func.func @transform_12(%arg0: i32, %arg1: i32) -> (i32, i32, i32) {
    %c0_i32 = arith.constant 0 : i32
    %c0_i32_0 = arith.constant 0 : i32
    return %arg0, %c0_i32, %arg1 : i32, i32, i32
  }
  func.func @transform_13(%arg0: i32, %arg1: i32) -> (i32, i32, i32) {
    %c0_i32 = arith.constant 0 : i32
    %c0_i32_0 = arith.constant 0 : i32
    return %arg0, %c0_i32, %arg1 : i32, i32, i32
  }
  func.func @transform_14(%arg0: i32, %arg1: i32) -> (i32, i32, i32) {
    %c0_i32 = arith.constant 0 : i32
    %c0_i32_0 = arith.constant 0 : i32
    %c0_i32_1 = arith.constant 0 : i32
    return %arg0, %c0_i32, %c0_i32_0 : i32, i32, i32
  }
}

</mosaic_0001>

<bundles_post_ra>
// kernel: tpu_custom_call.1
= control target key start
LH: loop header
LB: loop body
LE: loop exit
PB: predicated region body
PF: predicated region fallthrough
CT: control target
= control target key end

     0   :  { %s4197_s0 = inlined_call_operand.vmem [shape: f32[2,256,2], index: 0, kind: input, shape index: {}]   ;;  %s4198_s1 = inlined_call_operand.vmem [shape: bf16[2,34,256], index: 1, kind: input, shape index: {}]   ;;  %s4199_s2 = inlined_call_operand.vmem [shape: f32[2,256], index: 2, kind: input, shape index: {}]   ;;  %s4200_s3 = inlined_call_operand.vmem [shape: f32[2,32,256], index: 3, kind: input, shape index: {}]   ;;  %s4201_s4 = inlined_call_operand.vmem [shape: f32[16,3], index: 4, kind: input, shape index: {}]   ;;  %s4202_s5 = inlined_call_operand.vmem [shape: f32[32,16], index: 5, kind: input, shape index: {}]   ;;  %s4203_s6 = inlined_call_operand.vmem [shape: f32[32,32], index: 6, kind: input, shape index: {}]   ;;  %s4204_s7 = inlined_call_operand.vmem [shape: f32[32,32], index: 7, kind: input, shape index: {}]   ;;  %s4205_s8 = inlined_call_operand.vmem [shape: f32[32,32], index: 8, kind: input, shape index: {}]   ;;  %s4206_s9 = inlined_call_operand.vmem [shape: f32[16,32], index: 9, kind: input, shape index: {}]   ;;  %s4207_s10 = inlined_call_operand.vmem [shape: f32[64,16], index: 10, kind: input, shape index: {}]   ;;  %s4208_s11 = inlined_call_operand.vmem [shape: f32[144,1], index: 11, kind: input, shape index: {}]   ;;  %s4209_s12 = inlined_call_operand.hbm [shape: f32[2,32,256], index: 12, kind: output, shape index: {0}]   ;;  %s4210_s13 = inlined_call_operand.hbm [shape: f32[2,32,256], index: 13, kind: output, shape index: {1}]   ;;  %s4211_s14 = inlined_call_operand.vmem [shape: f32[2,64,1], index: 14, kind: output, shape index: {2}]  }
   0x1   :  { %4231 = sst [smem:[#allocation23_spill]] %s4197_s0 }
   0x2   :  { %4232 = sst [smem:[#allocation24_spill]] %s4198_s1 }
   0x3   :  { %4233 = sst [smem:[#allocation25_spill]] %s4200_s3 }
   0x4   :  { %4234 = sst [smem:[#allocation26_spill]] %s4207_s10 }
   0x5   :  { %4235 = sst [smem:[#allocation27_spill]] %s4209_s12 }
   0x6   :  { %4236 = sst [smem:[#allocation28_spill]] %s4210_s13 }
   0x7   :  { %20 = vsyncpa [#allocation5], 0 }
   0x8   :  { %22 = vsyncpa [#allocation5 + $0x1], 0 }
   0x9   :  { %23 = vsyncpa [#allocation7], 0 }
   0xa   :  { %25 = vsyncpa [#allocation7 + $0x1], 0  ;;  %s3323_s29 = smov 0   ;;  %s3325_s30 = smov 0  }
   0xb   :  { %s3327_s15 = smov 0   ;;  %s3329_s16 = smov 0  }
   0xc   :  { %s3331_s17 = smov 0   ;;  %s3333_s18 = smov 0  }
   0xd   :  { %s3335_s19 = smov 0   ;;  %s3337_s20 = smov 0  }
   0xe LB: > { %4237 = sst [smem:[#allocation10_spill]] %s3208_s29  ;;  %s2582_s21 = sadd.s32 4294967295, %s3236_s20   ;;  %s3236_s20 = sphi %s3337_s20, %s31_s20   ;;  %s3232_s19 = sphi %s3335_s19, %s4280_s19   ;;  %s3228_s18 = sphi %s3333_s18, %s4279_s18   ;;  %s3224_s17 = sphi %s3331_s17, %s4278_s17   ;;  %s3220_s16 = sphi %s3329_s16, %s4277_s16   ;;  %s3216_s15 = sphi %s3327_s15, %s4276_s15   ;;  %s3212_s30 = sphi %s3325_s30, %s4275_s30   ;;  %s3208_s29 = sphi %s3323_s29, %s4274_s29  }
   0xf   : > { %4238 = sst [smem:[#allocation11_spill]] %s3212_s30  ;;  %s2583_s22 = sadd.s32 4294967294, %s3236_s20  }
  0x10   : > { %4239 = sst [smem:[#allocation12_spill]] %s3216_s15  ;;  %s40_s23 = sadd.s32 1, %s3228_s18 }
  0x11   : > { %4240 = sst [smem:[#allocation13_spill]] %s3224_s17  ;;  %p41_p0 = scmp.ge.s32.totalorder %s40_s23, 2 }
  0x12   : > { %4241 = sst [smem:[#allocation14_spill]] %s3228_s18  ;;  %s43_s24 = sadd.s32 1, %s3232_s19 }
  0x13   : > { %4242 = sst [smem:[#allocation15_spill]] %s3232_s19  ;;  %p137_p1 = scmp.ne.s32.totalorder %s3216_s15, %s3212_s30 }
  0x14   : > { %4243 = sst [smem:[#allocation16_spill]] %s3236_s20  ;;  %p138_p2 = scmp.eq.s32.totalorder %s3236_s20, 0 }
  0x15   : > { %s4282_s23 = smov (%p41_p0, %s40_s23), 0  ;;  %s4284_s24 = smov (!%p41_p0, %s43_s24), %s3232_s19 }
  0x16   : > { %4244 = sst [smem:[#allocation17_spill]] %s4282_s23  ;;  %s126_s25 = ssub.s32 %s3228_s18, %s4282_s23 }
  0x17   : > { %p3375_p3 = por %p138_p2, %p137_p1  ;;  %p45_p4 = scmp.ge.s32.totalorder %s4284_s24, 2 }
  0x18   : > { %p337_p5 = scmp.eq.s32.totalorder %s2582_s21, 3  ;;  %p342_p6 = scmp.ne.s32.totalorder %s3212_s30, %s3208_s29 }
  0x19   : > { %p343_p7 = scmp.eq.s32.totalorder %s2583_s22, 3  ;;  %s4286_s24 = smov (%p45_p4, %s4284_s24), 0 }
  0x1a   : > { %4246 = sst [smem:[#allocation18_spill]] %s4286_s24  ;;  %p3383_p8 = por %p337_p5, %p137_p1 }
  0x1b   : > { %p3387_p9 = por %p343_p7, %p342_p6  ;;  %s125_s23 = ssub.s32 %s3232_s19, %s4286_s24 }
  0x1c   : > { %s4247_s27 = scalar_select %p3383_p8, 1, 0 }
  0x1d   : > { %s4249_s28 = scalar_select %p3387_p9, 1, 0 }
  0x1e   : > { %4248 = sst [smem:[#allocation19_spill]] %s4247_s27  ;;  %s127_s13 = sor.u32 %s126_s25, %s125_s23 }
  0x1f   : > { %4250 = sst [smem:[#allocation20_spill]] %s4249_s28  ;;  %s130_s12 = sadd.s32 1, %s3216_s15 }
  0x20   : > { %p128_p10 = scmp.eq.s32.totalorder %s127_s13, 0  ;;  %p2585_p11 = scmp.ge.s32.totalorder %s3236_s20, 4 }
  0x22   : > { %s3395_s10 = scalar_select %p128_p10, %s3216_s15, %s130_s12  }
  0x23   : > { %437 = sbr.rel (%p2585_p11) target bundleno = 54 (0x36), region = 48 }
  0x24   : > { %4251 = sst [smem:[#allocation21_spill]] %s3395_s10 }
  0x2a   : > { %463 = sbr.rel (!%p3375_p3) target bundleno = 54 (0x36), region = 64  ;;  %s465_s21 = sand.u32 (%p3375_p3), 1, %s3216_s15  }
  0x2b   : > { %s2587_s22 = sshll.u32 (%p3375_p3), %s3232_s19, 3  ;;  %s2586_s29 = sshll.u32 (%p3375_p3), %s465_s21, 5 }
  0x2c   : > { %s469_s27 = sadd.s32 (%p3375_p3), %s3228_s18, %s2587_s22  ;;  %s4252_s3 = sld [smem:[#allocation25_spill]] (%p3375_p3) }
  0x2d   : > { %s2588_s28 = sshll.u32 (%p3375_p3), %s469_s27, 3  ;;  %s467_s12 = scalar_lea.vmem (%p3375_p3), [#allocation3], %s2586_s29 }
  0x32   : > { %s471_s13 = scalar_lea.vmem %s4252_s3, %s2588_s28 }
  0x33   : > { %v505_v0 = vld [vmem:[%s471_s13] sm:$0xff]  ;;  %v507_v1 = vld [vmem:[%s471_s13 + $0x10] sm:$0xff] }
  0x34   : > { %v509_v2 = vld [vmem:[%s471_s13 + $0x20] sm:$0xff]  ;;  %506 = vst [vmem:[%s467_s12] sm:$0xff] %v505_v0  ;;  %508 = vst [vmem:[%s467_s12 + $0x8] sm:$0xff] %v507_v1  ;;  %v511_v3 = vld [vmem:[%s471_s13 + $0x30] sm:$0xff] }
  0x35   : > { %510 = vst [vmem:[%s467_s12 + $0x10] sm:$0xff] %v509_v2  ;;  %512 = vst [vmem:[%s467_s12 + $0x18] sm:$0xff] %v511_v3 }
  0x36 PF: > { %p2589_p12 = scmp.ge.s32.totalorder %s3236_s20, 1  ;;  %p517_p13 = scmp.lt.s32.totalorder %s3236_s20, 5 }
  0x38   : > { %p518_p0 = pnand %p2589_p12, %p517_p13 }
  0x3a   : > { %521 = sbr.rel (%p518_p0) target bundleno = 2114 (0x842), region = 102 }
  0x41   : > { %s3409_s24 = sand.u32 1, %s3212_s30   ;;  %p593_p1 = scmp.lt.s32.totalorder %s3224_s17, 1 }
  0x42   : > { %4253 = sst [smem:[#allocation22_spill]] %s3409_s24  ;;  %s2590_s29 = sshll.u32 %s3409_s24, 5 }
  0x43   : > { %p603_p2 = scmp.lt.s32.totalorder %s3220_s16, 1  ;;  %s4254_s0 = sld [smem:[#allocation23_spill]] }
  0x44   : > { %s594_s25 = scalar_select %p593_p1, %s3224_s17, 1 }
  0x45   : > { %s604_s26 = scalar_select %p603_p2, %s3220_s16, 1 }
  0x46   : > { %s2717_s27 = sshll.u32 %s594_s25, 8  ;;  %s2920_s28 = smul.u32 40, %s594_s25 }
  0x47   : > { %s2596_s13 = sshll.u32 %s604_s26, 1  ;;  %s4255_s1 = sld [smem:[#allocation24_spill]] }
  0x48   : > { %s3429_s15 = scalar_lea.vmem %s4199_s2, %s2596_s13  ;;  %s2718_s30 = sshll.u32 %s594_s25, 6 }
  0x49   : > { %s3419_s23 = scalar_lea.vmem %s4254_s0, %s2717_s27  ;;  %s3434_s17 = scalar_lea.vmem %s4211_s14, %s2718_s30 }
  0x4a   : > { %s3436_s21 = scalar_lea.vmem [#allocation3], %s2590_s29  ;;  %s3438_s27 = scalar_lea.vmem [#allocation4], %s2590_s29 }
  0x4b   : > { %s3440_s26 = scalar_lea.vmem [#allocation6], %s2590_s29  ;;  %p2599_p3 = scmp.ne.s32.totalorder %s3220_s16, 0 }
  0x4c   : > { %vm617_vm0 = vcmask (!%p2599_p3), 7168   ;;  %v3238_v4 = vmov (!%p2599_p3), 0.0  }
  0x4d   : > { %s3424_s19 = scalar_lea.vmem %s4255_s1, %s2920_s28  ;;  %616 = sbr.rel (%p2599_p3) target bundleno = 84 (0x54), region = 110  ;;  %618 = vst.msk [vmem:[#allocation2] sm:$0xff] (!%p2599_p3), %vm617_vm0, %v3238_v4  ;;  %619 = vst.msk [vmem:[#allocation2 + $0x8] sm:$0xff] (!%p2599_p3), %vm617_vm0, %v3238_v4 }
  0x4e   : > { %620 = vst.msk [vmem:[#allocation2 + $0x10] sm:$0xff] (!%p2599_p3), %vm617_vm0, %v3238_v4  ;;  %621 = vst.msk [vmem:[#allocation2 + $0x18] sm:$0xff] (!%p2599_p3), %vm617_vm0, %v3238_v4 }
  0x54 PF: > { %v642_v5 = vld [vmem:[%s3419_s23 + $0x10] sm:$0xff]  ;;  %v640_v6 = vld [vmem:[%s3419_s23] sm:$0xff]  ;;  %v3239_v7 = vmov 0   ;;  %v643_v8 = vld [vmem:[%s3419_s23 + $0x18] sm:$0xff]  ;;  %v3240_v15 = vmov 1   ;;  %v3241_v39 = vmov 2   ;;  %v842_v41 = vlaneseq }
  0x55   : > { %3006 = vset.pattern.permute.xlu1 %v3239_v7  ;;  %3005 = vset.pattern.permute.xlu0 %v3239_v7  ;;  %v641_v9 = vld [vmem:[%s3419_s23 + $0x8] sm:$0xff]  ;;  %v644_v11 = vld [vmem:[%s3419_s23 + $0x20] sm:$0xff]  ;;  %v647_v12 = vld [vmem:[%s3419_s23 + $0x38] sm:$0xff]  ;;  %p2690_p4 = scmp.ne.s32.totalorder %s3220_s16, 1 }
  0x56   : > { %694 = vperm.xlu1 %3006, %v642_v5   ;;  %684 = vperm.xlu0 %3005, %v640_v6   ;;  %v645_v10 = vld [vmem:[%s3419_s23 + $0x28] sm:$0xff]  ;;  %v646_v13 = vld [vmem:[%s3419_s23 + $0x30] sm:$0xff]  ;;  %v648_v20 = vld [vmem:[%s3419_s23 + $0x40] sm:$0xff]  ;;  %v3512_v44 = vshrl.u32 %v842_v41, 7  ;;  %s4263_s18 = sld [smem:[#allocation26_spill]] (!%p2690_p4) }
  0x57   : > { %v649_v14 = vld [vmem:[%s3419_s23 + $0x48] sm:$0xff]  ;;  %v650_v22 = vld [vmem:[%s3419_s23 + $0x50] sm:$0xff]  ;;  %v651_v23 = vld [vmem:[%s3419_s23 + $0x58] sm:$0xff] }
  0x58   : > { %v653_v16 = vld [vmem:[%s3419_s23 + $0x68] sm:$0xff]  ;;  %v652_v24 = vld [vmem:[%s3419_s23 + $0x60] sm:$0xff]  ;;  %v654_v25 = vld [vmem:[%s3419_s23 + $0x70] sm:$0xff]  ;;  %v844_v47 = vsub.s32 0, %v3512_v44  ;;  %v4230_v51 = vsub.s32 1, %v3512_v44 }
  0x59   : > { %v657_v17 = vld [vmem:[%s3419_s23 + $0x88] sm:$0xff]  ;;  %v655_v26 = vld [vmem:[%s3419_s23 + $0x78] sm:$0xff]  ;;  %v656_v27 = vld [vmem:[%s3419_s23 + $0x80] sm:$0xff] }
  0x5a   : > { %699 = vperm.xlu1 %3006, %v643_v8   ;;  %689 = vperm.xlu0 %3005, %v641_v9   ;;  %v3458_v18 = vld [vmem:[%s3419_s23 + $0xa8] sm:$0xff]  ;;  %v659_v28 = vld [vmem:[%s3419_s23 + $0x98] sm:$0xff]  ;;  %v660_v29 = vld [vmem:[%s3419_s23 + $0xa0] sm:$0xff] }
  0x5b   : > { %v3462_v19 = vld [vmem:[%s3419_s23 + $0xc8] sm:$0xff]  ;;  %v658_v30 = vld [vmem:[%s3419_s23 + $0x90] sm:$0xff]  ;;  %v663_v31 = vld [vmem:[%s3419_s23 + $0xb8] sm:$0xff] }
  0x5c   : > { %v3468_v21 = vld [vmem:[%s3419_s23 + $0xe8] sm:$0xff]  ;;  %v664_v32 = vld [vmem:[%s3419_s23 + $0xc0] sm:$0xff]  ;;  %v667_v33 = vld [vmem:[%s3419_s23 + $0xd8] sm:$0xff]  ;;  %s4264_s24 = smov (!%p2690_p4), %s4263_s18 }
  0x5d   : > { %v668_v34 = vld [vmem:[%s3419_s23 + $0xe0] sm:$0xff]  ;;  %v671_v35 = vld [vmem:[%s3419_s23 + $0xf8] sm:$0xff]  ;;  %v662_v36 = vld [vmem:[%s3419_s23 + $0xb0] sm:$0xff] }
  0x5e   : > { %709 = vperm.xlu1 %3006, %v645_v10   ;;  %704 = vperm.xlu0 %3005, %v644_v11   ;;  %v3496_v37 = vld [vmem:[%s4201_s4 + $0x8] sm:$0xff]  ;;  %v3503_v38 = vld [vmem:[%s4201_s4] sm:$0xff]  ;;  %v666_v40 = vld [vmem:[%s3419_s23 + $0xd0] sm:$0xff] }
  0x5f   : > { %v3522_v50 = vld [vmem:[%s3429_s15] sm:$0x3]  ;;  %v670_v61 = vld [vmem:[%s3419_s23 + $0xf0] sm:$0xff] }
  0x60   : > { %v3528_v52 = vrot.slane %v3522_v50, %v844_v47  ;;  %v3536_v56 = vrot.slane %v3522_v50, %v4230_v51 }
  0x62   : > { %719 = vperm.xlu1 %3006, %v647_v12   ;;  %714 = vperm.xlu0 %3005, %v646_v13  }
  0x66   : > { %3007 = vset.pattern.permute.xlu1 %v3240_v15  ;;  %729 = vperm.xlu0 %3005, %v649_v14  }
  0x67   : > { %883 = vperm.xlu1 %3007, %v641_v9  }
  0x6a   : > { %749 = vperm.xlu0 %3005, %v653_v16  }
  0x6b   : > { %887 = vperm.xlu1 %3007, %v642_v5  }
  0x6e   : > { %769 = vperm.xlu0 %3005, %v657_v17  }
  0x6f   : > { %895 = vperm.xlu1 %3007, %v644_v11  }
  0x72   : > { %789 = vperm.xlu0 %3005, %v3458_v18  }
  0x73   : > { %903 = vperm.xlu1 %3007, %v646_v13  }
  0x76   : > { %809 = vperm.xlu0 %3005, %v3462_v19  }
  0x77   : > { %3008 = vset.pattern.permute.xlu1 %v3239_v7 }
  0x78   : > { %724 = vperm.xlu1 %3008, %v648_v20  }
  0x7a   : > { %829 = vperm.xlu0 %3005, %v3468_v21  }
  0x7c   : > { %734 = vperm.xlu1 %3008, %v650_v22  }
  0x7e   : > { %3019 = vset.pattern.permute.xlu0 %v3240_v15 }
  0x7f   : > { %879 = vperm.xlu0 %3019, %v640_v6  }
  0x80   : > { %739 = vperm.xlu1 %3008, %v651_v23  }
  0x83   : > { %891 = vperm.xlu0 %3019, %v643_v8  }
  0x84   : > { %3009 = vset.pattern.permute.xlu1 %v3240_v15 }
  0x85   : > { %915 = vperm.xlu1 %3009, %v649_v14  }
  0x87   : > { %899 = vperm.xlu0 %3019, %v645_v10  }
  0x89   : > { %919 = vperm.xlu1 %3009, %v650_v22  }
  0x8b   : > { %907 = vperm.xlu0 %3019, %v647_v12  }
  0x8d   : > { %3010 = vset.pattern.permute.xlu1 %v3239_v7 }
  0x8e   : > { %744 = vperm.xlu1 %3010, %v652_v24  }
  0x8f   : > { %911 = vperm.xlu0 %3019, %v648_v20  }
  0x92   : > { %754 = vperm.xlu1 %3010, %v654_v25  }
  0x93   : > { %923 = vperm.xlu0 %3019, %v651_v23  }
  0x96   : > { %759 = vperm.xlu1 %3010, %v655_v26  }
  0x97   : > { %927 = vperm.xlu0 %3019, %v652_v24  }
  0x9a   : > { %3011 = vset.pattern.permute.xlu1 %v3240_v15 }
  0x9b   : > { %931 = vperm.xlu1 %3011, %v653_v16   ;;  %939 = vperm.xlu0 %3019, %v655_v26  }
  0x9f   : > { %935 = vperm.xlu1 %3011, %v654_v25   ;;  %943 = vperm.xlu0 %3019, %v656_v27  }
  0xa3   : > { %3012 = vset.pattern.permute.xlu1 %v3239_v7  ;;  %955 = vperm.xlu0 %3019, %v659_v28  }
  0xa4   : > { %764 = vperm.xlu1 %3012, %v656_v27  }
  0xa7   : > { %959 = vperm.xlu0 %3019, %v660_v29  }
  0xa8   : > { %774 = vperm.xlu1 %3012, %v658_v30  }
  0xab   : > { %971 = vperm.xlu0 %3019, %v663_v31  }
  0xac   : > { %779 = vperm.xlu1 %3012, %v659_v28  }
  0xaf   : > { %975 = vperm.xlu0 %3019, %v664_v32  }
  0xb0   : > { %3013 = vset.pattern.permute.xlu1 %v3240_v15 }
  0xb1   : > { %947 = vperm.xlu1 %3013, %v657_v17  }
  0xb3   : > { %987 = vperm.xlu0 %3019, %v667_v33  }
  0xb5   : > { %951 = vperm.xlu1 %3013, %v658_v30  }
  0xb7   : > { %991 = vperm.xlu0 %3019, %v668_v34  }
  0xb9   : > { %3014 = vset.pattern.permute.xlu1 %v3239_v7 }
  0xba   : > { %784 = vperm.xlu1 %3014, %v660_v29  }
  0xbb   : > { %1003 = vperm.xlu0 %3019, %v671_v35  }
  0xbe   : > { %794 = vperm.xlu1 %3014, %v662_v36  }
  0xbf   : > { %3022 = vset.pattern.permute.xlu0 %v3239_v7 }
  0xc0   : > { %1387 = vperm.xlu0 %3022, %v3496_v37  }
  0xc2   : > { %799 = vperm.xlu1 %3014, %v663_v31  }
  0xc4   : > { %3024 = vset.pattern.permute.xlu0 %v3241_v39 }
  0xc5   : > { %1413 = vperm.xlu0 %3024, %v3503_v38  }
  0xc6   : > { %3015 = vset.pattern.permute.xlu1 %v3240_v15 }
  0xc7   : > { %963 = vperm.xlu1 %3015, %v3458_v18  }
  0xc9   : > { %3027 = vset.pattern.permute.xlu0 %v3239_v7 }
  0xcb   : > { %967 = vperm.xlu1 %3015, %v662_v36  }
  0xcf   : > { %3016 = vset.pattern.permute.xlu1 %v3239_v7 }
  0xd0   : > { %804 = vperm.xlu1 %3016, %v664_v32  }
  0xd4   : > { %814 = vperm.xlu1 %3016, %v666_v40  }
  0xd5   : > { %v695_v42 = vpop.permute.xlu1 %694  ;;  %v685_v43 = vpop.permute.xlu0 %684 }
  0xd6   : > { %v848_v10 = vsub.f32 %v695_v42, %v3528_v52  ;;  %v846_v28 = vsub.f32 %v685_v43, %v3528_v52 }
  0xd8   : > { %819 = vperm.xlu1 %3016, %v667_v33   ;;  %v1042_v30 = vmul.f32 %v846_v28, %v846_v28 }
  0xd9   : > { %v3514_v45 = vpop.permute.xlu1 %699  ;;  %v690_v46 = vpop.permute.xlu0 %689 }
  0xda   : > { %v847_v55 = vsub.f32 %v690_v46, %v3528_v52 }
  0xdc   : > { %3017 = vset.pattern.permute.xlu1 %v3240_v15  ;;  %v1043_v59 = vmul.f32 %v847_v55, %v847_v55 }
  0xdd   : > { %v3518_v48 = vpop.permute.xlu1 %709  ;;  %979 = vperm.xlu1 %3017, %v3462_v19   ;;  %v705_v49 = vpop.permute.xlu0 %704  ;;  %v1044_v19 = vmul.f32 %v848_v10, %v848_v10 }
  0xde   : > { %v850_v1 = vsub.f32 %v705_v49, %v3528_v52  ;;  %v851_v41 = vsub.f32 %v3518_v48, %v3528_v52 }
  0xe0   : > { %v1046_v5 = vmul.f32 %v850_v1, %v850_v1 }
  0xe1   : > { %v3530_v53 = vpop.permute.xlu1 %719  ;;  %983 = vperm.xlu1 %3017, %v666_v40   ;;  %v715_v54 = vpop.permute.xlu0 %714 }
  0xe2   : > { %v852_v6 = vsub.f32 %v715_v54, %v3528_v52 }
  0xe4   : > { %v1048_v14 = vmul.f32 %v852_v6, %v852_v6 }
  0xe5   : > { %3018 = vset.pattern.permute.xlu1 %v3239_v7  ;;  %v730_v57 = vpop.permute.xlu0 %729 }
  0xe6   : > { %824 = vperm.xlu1 %3018, %v668_v34   ;;  %v884_v58 = vpop.permute.xlu1 %883  ;;  %v855_v33 = vsub.f32 %v730_v57, %v3528_v52  ;;  %v1047_v57 = vmul.f32 %v851_v41, %v851_v41 }
  0xe7   : > { %v1011_v60 = vsub.f32 %v884_v58, %v3536_v56 }
  0xe8   : > { %v1051_v42 = vmul.f32 %v855_v33, %v855_v33 }
  0xe9   : > { %v1075_v62 = vmul.f32 %v1011_v60, %v1011_v60  ;;  %v3541_v63 = vpop.permute.xlu0 %749 }
  0xea   : > { %834 = vperm.xlu1 %3018, %v670_v61   ;;  %v888_v0 = vpop.permute.xlu1 %887  ;;  %v859_v41 = vsub.f32 %v3541_v63, %v3528_v52 }
  0xeb   : > { %v3544_v2 = vadd.f32 %v1075_v62, %v1043_v59  ;;  %v1012_v8 = vsub.f32 %v888_v0, %v3536_v56 }
  0xec   : > { %v1055_v63 = vmul.f32 %v859_v41, %v859_v41 }
  0xed   : > { %v3546_v3 = vpop.permute.xlu0 %769  ;;  %v1076_v16 = vmul.f32 %v1012_v8, %v1012_v8 }
  0xee   : > { %839 = vperm.xlu1 %3018, %v671_v35   ;;  %v896_v4 = vpop.permute.xlu1 %895 }
  0xef   : > { %v1014_v9 = vsub.f32 %v896_v4, %v3536_v56  ;;  %v3561_v23 = vadd.f32 %v1076_v16, %v1044_v19  ;;  %v853_v16 = vsub.f32 %v3530_v53, %v3528_v52 }
  0xf1   : > { %v1078_v11 = vmul.f32 %v1014_v9, %v1014_v9  ;;  %v3552_v12 = vpop.permute.xlu0 %789 }
  0xf2   : > { %3020 = vset.pattern.permute.xlu1 %v3240_v15  ;;  %v904_v13 = vpop.permute.xlu1 %903 }
  0xf3   : > { %v3555_v17 = vadd.f32 %v1078_v11, %v1046_v5  ;;  %v1016_v18 = vsub.f32 %v904_v13, %v3536_v56  ;;  %995 = vperm.xlu1 %3020, %v3468_v21  }
  0xf5   : > { %v1080_v20 = vmul.f32 %v1016_v18, %v1016_v18  ;;  %v3559_v22 = vpop.permute.xlu0 %809 }
  0xf7   : > { %v3563_v24 = vadd.f32 %v1080_v20, %v1048_v14  ;;  %999 = vperm.xlu1 %3020, %v670_v61   ;;  %v725_v25 = vpop.permute.xlu1 %724 }
  0xf8   : > { %v854_v1 = vsub.f32 %v725_v25, %v3528_v52  ;;  %v849_v25 = vsub.f32 %v3514_v45, %v3528_v52 }
  0xf9   : > { %v1140_v26 = vmin.f32 %v3561_v23, %v3563_v24  ;;  %v3567_v27 = vpop.permute.xlu0 %829 }
  0xfa   : > { %v1050_v11 = vmul.f32 %v854_v1, %v854_v1 }
  0xfb   : > { %v735_v29 = vpop.permute.xlu1 %734  ;;  %3021 = vset.pattern.permute.xlu1 %v3239_v7 }
  0xfc   : > { %1382 = vperm.xlu1 %3021, %v3503_v38   ;;  %v856_v49 = vsub.f32 %v735_v29, %v3528_v52 }
  0xfe   : > { %v880_v21 = vpop.permute.xlu0 %879  ;;  %v1052_v61 = vmul.f32 %v856_v49, %v856_v49 }
  0xff   : > { %v1010_v31 = vsub.f32 %v880_v21, %v3536_v56  ;;  %v740_v32 = vpop.permute.xlu1 %739 }
 0x100   : > { %3023 = vset.pattern.permute.xlu1 %v3240_v15  ;;  %v857_v28 = vsub.f32 %v740_v32, %v3528_v52 }
 0x101   : > { %v1074_v34 = vmul.f32 %v1010_v31, %v1010_v31  ;;  %1397 = vperm.xlu1 %3023, %v3503_v38   ;;  %v1049_v31 = vmul.f32 %v853_v16, %v853_v16 }
 0x102   : > { %v892_v35 = vpop.permute.xlu0 %891  ;;  %v1053_v45 = vmul.f32 %v857_v28, %v857_v28 }
 0x103   : > { %v3576_v36 = vadd.f32 %v1074_v34, %v1042_v30  ;;  %v1013_v18 = vsub.f32 %v892_v35, %v3536_v56 }
 0x104   : > { %v916_v40 = vpop.permute.xlu1 %915 }
 0x105   : > { %v1138_v43 = vmin.f32 %v3576_v36, %v3555_v17  ;;  %v1019_v46 = vsub.f32 %v916_v40, %v3536_v56  ;;  %1401 = vperm.xlu1 %3023, %v3496_v37   ;;  %v1077_v53 = vmul.f32 %v1013_v18, %v1013_v18  ;;  %v1045_v40 = vmul.f32 %v849_v25, %v849_v25 }
 0x106   : > { %v900_v15 = vpop.permute.xlu0 %899 }
 0x107   : > { %v1083_v54 = vmul.f32 %v1019_v46, %v1019_v46  ;;  %v1015_v38 = vsub.f32 %v900_v15, %v3536_v56  ;;  %v3624_v49 = vadd.f32 %v1077_v53, %v1045_v40 }
 0x108   : > { %v920_v55 = vpop.permute.xlu1 %919 }
 0x109   : > { %v3586_v58 = vadd.f32 %v1083_v54, %v1051_v42  ;;  %v1079_v59 = vmul.f32 %v1015_v38, %v1015_v38  ;;  %v1020_v48 = vsub.f32 %v920_v55, %v3536_v56  ;;  %3025 = vset.pattern.permute.xlu1 %v3241_v39 }
 0x10a   : > { %v908_v60 = vpop.permute.xlu0 %907  ;;  %1417 = vperm.xlu1 %3025, %v3496_v37  }
 0x10b   : > { %v3591_v62 = vadd.f32 %v1079_v59, %v1047_v57  ;;  %v1084_v0 = vmul.f32 %v1020_v48, %v1020_v48  ;;  %v1017_v10 = vsub.f32 %v908_v60, %v3536_v56 }
 0x10d   : > { %v1139_v4 = vmin.f32 %v3544_v2, %v3591_v62  ;;  %v3596_v5 = vadd.f32 %v1084_v0, %v1052_v61  ;;  %v745_v6 = vpop.permute.xlu1 %744 }
 0x10e   : > { %v912_v8 = vpop.permute.xlu0 %911  ;;  %3026 = vset.pattern.permute.xlu1 %v3239_v7  ;;  %v858_v29 = vsub.f32 %v745_v6, %v3528_v52 }
 0x10f   : > { %v3600_v39 = vmin.f32 %v1140_v26, %v3596_v5  ;;  %v1018_v37 = vsub.f32 %v912_v8, %v3536_v56  ;;  %v3604_v9 = vmin.f32 %v1139_v4, %v3586_v58  ;;  %v1081_v26 = vmul.f32 %v1017_v10, %v1017_v10 }
 0x110   : > { %v1054_v46 = vmul.f32 %v858_v29, %v858_v29 }
 0x111   : > { %v1082_v13 = vmul.f32 %v1018_v37, %v1018_v37  ;;  %v755_v14 = vpop.permute.xlu1 %754  ;;  %v3621_v42 = vadd.f32 %v1081_v26, %v1049_v31 }
 0x112   : > { %v924_v19 = vpop.permute.xlu0 %923  ;;  %v860_v60 = vsub.f32 %v755_v14, %v3528_v52 }
 0x113   : > { %v3610_v7 = vadd.f32 %v1082_v13, %v1050_v11  ;;  %v1021_v20 = vsub.f32 %v924_v19, %v3536_v56  ;;  %v1141_v48 = vmin.f32 %v3624_v49, %v3621_v42 }
 0x114   : > { %v1056_v14 = vmul.f32 %v860_v60, %v860_v60 }
 0x115   : > { %v1142_v21 = vmin.f32 %v1138_v43, %v3610_v7  ;;  %v760_v30 = vpop.permute.xlu1 %759  ;;  %v1085_v34 = vmul.f32 %v1021_v20, %v1021_v20 }
 0x116   : > { %v928_v33 = vpop.permute.xlu0 %927  ;;  %v861_v32 = vsub.f32 %v760_v30, %v3528_v52 }
 0x117   : > { %v1022_v35 = vsub.f32 %v928_v33, %v3536_v56  ;;  %v3626_v38 = vadd.f32 %v1085_v34, %v1053_v45  ;;  %v3030_v34 = vld [vmem:[%s3424_s19 + $0x4] ss:$8 sps:$4 sm:$0xff]  }
 0x118   : > { %v1057_v61 = vmul.f32 %v861_v32, %v861_v32  ;;  %1346 = vmatprep.mubr.bf16.mxu0 %v3030_v34 }
 0x119   : > { %v1086_v15 = vmul.f32 %v1022_v35, %v1022_v35  ;;  %v3637_v8 = vmin.f32 %v1141_v48, %v3626_v38  ;;  %v863_v35 = vsub.f32 %v3546_v3, %v3528_v52 }
 0x11a   : > { %v932_v43 = vpop.permute.xlu1 %931  ;;  %v940_v54 = vpop.permute.xlu0 %939 }
 0x11b   : > { %v3628_v55 = vadd.f32 %v1086_v15, %v1054_v46  ;;  %v1023_v57 = vsub.f32 %v932_v43, %v3536_v56  ;;  %v1025_v59 = vsub.f32 %v940_v54, %v3536_v56  ;;  %v1059_v45 = vmul.f32 %v863_v35, %v863_v35  ;;  %v629_v35 = vld [vmem:[%s4208_s11 + $0x38] sm:$0xff] }
 0x11d   : > { %v1146_v0 = vmin.f32 %v1142_v21, %v3628_v55  ;;  %v1087_v1 = vmul.f32 %v1023_v57, %v1023_v57  ;;  %v1089_v4 = vmul.f32 %v1025_v59, %v1025_v59 }
 0x11e   : > { %v936_v6 = vpop.permute.xlu1 %935  ;;  %v944_v13 = vpop.permute.xlu0 %943 }
 0x11f   : > { %v3639_v37 = vadd.f32 %v1087_v1, %v1055_v63  ;;  %v3641_v10 = vadd.f32 %v1089_v4, %v1057_v61  ;;  %v1024_v11 = vsub.f32 %v936_v6, %v3536_v56  ;;  %v1026_v16 = vsub.f32 %v944_v13, %v3536_v56  ;;  %v623_v1 = vld [vmem:[%s4208_s11 + $0x8] sm:$0xff]  ;;  %v624_v4 = vld [vmem:[%s4208_s11 + $0x10] sm:$0xff]  ;;  %v626_v6 = vld [vmem:[%s4208_s11 + $0x20] sm:$0xff] }
 0x120   : > { %1431 = vperm.xlu0 %3027, %v623_v1   ;;  %v638_v1 = vld [vmem:[%s4208_s11 + $0x80] sm:$0xff] }
 0x121   : > { %v1147_v18 = vmin.f32 %v3604_v9, %v3639_v37  ;;  %v1149_v19 = vmin.f32 %v3637_v8, %v3641_v10  ;;  %v1088_v20 = vmul.f32 %v1024_v11, %v1024_v11  ;;  %v1090_v28 = vmul.f32 %v1026_v16, %v1026_v16 }
 0x122   : > { %v867_v11 = vsub.f32 %v3552_v12, %v3528_v52 }
 0x123   : > { %v3649_v25 = vadd.f32 %v1088_v20, %v1056_v14  ;;  %v765_v26 = vpop.permute.xlu1 %764  ;;  %v625_v14 = vld [vmem:[%s4208_s11 + $0x18] sm:$0xff] }
 0x124   : > { %v862_v29 = vsub.f32 %v765_v26, %v3528_v52  ;;  %1458 = vperm.xlu0 %3027, %v626_v6   ;;  %v1063_v20 = vmul.f32 %v867_v11, %v867_v11 }
 0x125   : > { %v1148_v21 = vmin.f32 %v3600_v39, %v3649_v25 }
 0x126   : > { %v1058_v30 = vmul.f32 %v862_v29, %v862_v29  ;;  %v956_v29 = vpop.permute.xlu0 %955 }
 0x127   : > { %v775_v31 = vpop.permute.xlu1 %774 }
 0x128   : > { %v3654_v53 = vadd.f32 %v1090_v28, %v1058_v30  ;;  %v864_v39 = vsub.f32 %v775_v31, %v3528_v52  ;;  %v630_v30 = vld [vmem:[%s4208_s11 + $0x40] sm:$0xff] }
 0x12a   : > { %v3657_v33 = vmin.f32 %v1146_v0, %v3654_v53  ;;  %v1060_v54 = vmul.f32 %v864_v39, %v864_v39  ;;  %v622_v0 = vld [vmem:[%s4208_s11] sm:$0xff]  ;;  %v631_v39 = vld [vmem:[%s4208_s11 + $0x48] sm:$0xff] }
 0x12b   : > { %v3659_v9 = vpop.permute.xlu1 %779  ;;  %1426 = vperm.xlu1 %3026, %v622_v0   ;;  %v635_v0 = vld [vmem:[%s4208_s11 + $0x68] sm:$0xff] }
 0x12f   : > { %1448 = vperm.xlu1 %3026, %v624_v4  }
 0x130   : > { %v948_v40 = vpop.permute.xlu1 %947 }
 0x131   : > { %v1027_v41 = vsub.f32 %v948_v40, %v3536_v56  ;;  %v632_v40 = vld [vmem:[%s4208_s11 + $0x50] sm:$0xff] }
 0x133   : > { %v1091_v46 = vmul.f32 %v1027_v41, %v1027_v41  ;;  %1453 = vperm.xlu1 %3026, %v625_v14   ;;  %v960_v41 = vpop.permute.xlu0 %959 }
 0x134   : > { %v952_v32 = vpop.permute.xlu1 %951 }
 0x135   : > { %v3666_v15 = vadd.f32 %v1091_v46, %v1059_v45  ;;  %v1028_v43 = vsub.f32 %v952_v32, %v3536_v56  ;;  %v634_v46 = vld [vmem:[%s4208_s11 + $0x60] sm:$0xff] }
 0x137   : > { %v3670_v57 = vmin.f32 %v1147_v18, %v3666_v15  ;;  %v1092_v59 = vmul.f32 %v1028_v43, %v1028_v43  ;;  %v628_v18 = vld [vmem:[%s4208_s11 + $0x30] sm:$0xff]  ;;  %v972_v32 = vpop.permute.xlu0 %971 }
 0x138   : > { %1598 = vperm.xlu0 %3027, %v628_v18  }
 0x139   : > { %v3672_v63 = vadd.f32 %v1092_v59, %v1060_v54  ;;  %v3674_v3 = vpop.permute.xlu1 %784  ;;  %v633_v54 = vld [vmem:[%s4208_s11 + $0x58] sm:$0xff]  ;;  %v871_v59 = vsub.f32 %v3559_v22, %v3528_v52 }
 0x13a   : > { %v637_v22 = vld [vmem:[%s4208_s11 + $0x78] sm:$0xff] }
 0x13b   : > { %v3677_v48 = vmin.f32 %v1148_v21, %v3672_v63  ;;  %v627_v21 = vld [vmem:[%s4208_s11 + $0x28] sm:$0xff]  ;;  %v976_v6 = vpop.permute.xlu0 %975 }
 0x13c   : > { %1463 = vperm.xlu1 %3026, %v627_v21   ;;  %1608 = vperm.xlu0 %3027, %v630_v30   ;;  %v639_v21 = vld [vmem:[%s4208_s11 + $0x88] sm:$0xff] }
 0x13d   : > { %v3679_v60 = vpop.permute.xlu1 %794 }
 0x140   : > { %1603 = vperm.xlu1 %3026, %v629_v35   ;;  %1732 = vperm.xlu0 %3027, %v632_v40   ;;  %v1030_v35 = vsub.f32 %v960_v41, %v3536_v56  ;;  %v866_v40 = vsub.f32 %v3674_v3, %v3528_v52 }
 0x141   : > { %v3681_v61 = vpop.permute.xlu1 %799 }
 0x142   : > { %v869_v41 = vsub.f32 %v3681_v61, %v3528_v52 }
 0x144   : > { %1613 = vperm.xlu1 %3026, %v631_v39   ;;  %1742 = vperm.xlu0 %3027, %v634_v46   ;;  %v1029_v39 = vsub.f32 %v956_v29, %v3536_v56  ;;  %v865_v46 = vsub.f32 %v3659_v9, %v3528_v52  ;;  %v1033_v9 = vsub.f32 %v972_v32, %v3536_v56 }
 0x145   : > { %v1065_v32 = vmul.f32 %v869_v41, %v869_v41 }
 0x146   : > { %v964_v13 = vpop.permute.xlu1 %963 }
 0x147   : > { %v1031_v16 = vsub.f32 %v964_v13, %v3536_v56  ;;  %v1067_v13 = vmul.f32 %v871_v59, %v871_v59 }
 0x148   : > { %1737 = vperm.xlu1 %3026, %v633_v54  }
 0x149   : > { %v1095_v26 = vmul.f32 %v1031_v16, %v1031_v16 }
 0x14a   : > { %v968_v28 = vpop.permute.xlu1 %967 }
 0x14b   : > { %v3704_v12 = vadd.f32 %v1095_v26, %v1063_v20  ;;  %v988_v20 = vpop.permute.xlu0 %987  ;;  %v1032_v3 = vsub.f32 %v968_v28, %v3536_v56 }
 0x14c   : > { %1747 = vperm.xlu1 %3026, %v635_v0   ;;  %v1094_v0 = vmul.f32 %v1030_v35, %v1030_v35  ;;  %v1037_v35 = vsub.f32 %v988_v20, %v3536_v56 }
 0x14d   : > { %v1155_v31 = vmin.f32 %v3670_v57, %v3704_v12  ;;  %v636_v57 = vld [vmem:[%s4208_s11 + $0x70] sm:$0xff] }
 0x14e   : > { %1865 = vperm.xlu0 %3027, %v636_v57  }
 0x14f   : > { %v805_v34 = vpop.permute.xlu1 %804  ;;  %v992_v54 = vpop.permute.xlu0 %991 }
 0x150   : > { %1870 = vperm.xlu1 %3026, %v637_v22   ;;  %v870_v59 = vsub.f32 %v805_v34, %v3528_v52  ;;  %v868_v34 = vsub.f32 %v3679_v60, %v3528_v52 }
 0x152   : > { %1875 = vperm.xlu0 %3027, %v638_v1   ;;  %v1034_v1 = vsub.f32 %v976_v6, %v3536_v56  ;;  %v1066_v6 = vmul.f32 %v870_v59, %v870_v59 }
 0x153   : > { %v3720_v45 = vpop.permute.xlu1 %814  ;;  %v1004_v61 = vpop.permute.xlu0 %1003 }
 0x154   : > { %1880 = vperm.xlu1 %3026, %v639_v21   ;;  %v1098_v21 = vmul.f32 %v1034_v1, %v1034_v1  ;;  %v872_v60 = vsub.f32 %v3720_v45, %v3528_v52  ;;  %v1041_v20 = vsub.f32 %v1004_v61, %v3536_v56  ;;  %v1064_v1 = vmul.f32 %v868_v34, %v868_v34 }
 0x157   : > { %v820_v43 = vpop.permute.xlu1 %819 }
 0x158   : > { %v873_v28 = vsub.f32 %v820_v43, %v3528_v52  ;;  %v3783_v43 = vadd.f32 %v1098_v21, %v1066_v6  ;;  %v1105_v21 = vmul.f32 %v1041_v20, %v1041_v20 }
 0x15c   : > { %v980_v4 = vpop.permute.xlu1 %979 }
 0x15d   : > { %v1035_v11 = vsub.f32 %v980_v4, %v3536_v56  ;;  %v1062_v4 = vmul.f32 %v866_v40, %v866_v40 }
 0x15f   : > { %v1099_v16 = vmul.f32 %v1035_v11, %v1035_v11  ;;  %v1093_v11 = vmul.f32 %v1029_v39, %v1029_v39  ;;  %v3775_v40 = vadd.f32 %v1094_v0, %v1062_v4  ;;  %v1096_v39 = vmul.f32 %v1032_v3, %v1032_v3 }
 0x160   : > { %v984_v14 = vpop.permute.xlu1 %983  ;;  %v1101_v0 = vmul.f32 %v1037_v35, %v1037_v35  ;;  %v1069_v4 = vmul.f32 %v873_v28, %v873_v28 }
 0x161   : > { %v3746_v18 = vadd.f32 %v1099_v16, %v1067_v13  ;;  %v1061_v13 = vmul.f32 %v865_v46, %v865_v46  ;;  %v3790_v45 = vadd.f32 %v1096_v39, %v1064_v1 }
 0x162   : > { %v3800_v61 = vadd.f32 %v1101_v0, %v1069_v4 }
 0x163   : > { %v3749_v26 = vmin.f32 %v1155_v31, %v3746_v18  ;;  %v875_v31 = vsub.f32 %v3567_v27, %v3528_v52  ;;  %v1038_v27 = vsub.f32 %v992_v54, %v3536_v56  ;;  %v3777_v51 = vadd.f32 %v1093_v11, %v1061_v13 }
 0x164   : > { %v1068_v13 = vmul.f32 %v872_v60, %v872_v60 }
 0x165   : > { %v825_v30 = vpop.permute.xlu1 %824  ;;  %v1071_v22 = vmul.f32 %v875_v31, %v875_v31  ;;  %v1097_v31 = vmul.f32 %v1033_v9, %v1033_v9  ;;  %v1102_v59 = vmul.f32 %v1038_v27, %v1038_v27  ;;  %v1153_v6 = vmin.f32 %v1149_v19, %v3777_v51 }
 0x166   : > { %v874_v29 = vsub.f32 %v825_v30, %v3528_v52  ;;  %v1036_v30 = vsub.f32 %v984_v14, %v3536_v56 }
 0x167   : > { %v3788_v11 = vadd.f32 %v1097_v31, %v1065_v32 }
 0x168   : > { %v1070_v46 = vmul.f32 %v874_v29, %v874_v29  ;;  %v1100_v41 = vmul.f32 %v1036_v30, %v1036_v30  ;;  %v1154_v29 = vmin.f32 %v3657_v33, %v3775_v40 }
 0x169   : > { %v835_v57 = vpop.permute.xlu1 %834 }
 0x16a   : > { %v3792_v9 = vadd.f32 %v1102_v59, %v1070_v46  ;;  %v1158_v35 = vmin.f32 %v1154_v29, %v3783_v43  ;;  %v3802_v28 = vadd.f32 %v1100_v41, %v1068_v13  ;;  %v1388_v29 = vpop.permute.xlu0 %1387 }
 0x16c   : > { %v1162_v8 = vmin.f32 %v1158_v35, %v3792_v9 }
 0x16d   : > { %v840_v16 = vpop.permute.xlu1 %839 }
 0x16e   : > { %v877_v54 = vsub.f32 %v840_v16, %v3528_v52  ;;  %v876_v16 = vsub.f32 %v835_v57, %v3528_v52  ;;  %v1157_v52 = vmin.f32 %v1153_v6, %v3788_v11  ;;  %v1156_v57 = vmin.f32 %v3677_v48, %v3790_v45 }
 0x170   : > { %v1073_v27 = vmul.f32 %v877_v54, %v877_v54  ;;  %v1072_v19 = vmul.f32 %v876_v16, %v876_v16  ;;  %v1161_v60 = vmin.f32 %v1157_v52, %v3800_v61  ;;  %v1414_v52 = vpop.permute.xlu0 %1413 }
 0x172   : > { %v996_v14 = vpop.permute.xlu1 %995  ;;  %v3811_v39 = vadd.f32 %v1105_v21, %v1073_v27 }
 0x173   : > { %v1039_v3 = vsub.f32 %v996_v14, %v3536_v56 }
 0x174   : > { %v1165_v59 = vmin.f32 %v1161_v60, %v3811_v39 }
 0x175   : > { %v1103_v34 = vmul.f32 %v1039_v3, %v1039_v3 }
 0x176   : > { %v1000_v33 = vpop.permute.xlu1 %999 }
 0x177   : > { %v3804_v30 = vadd.f32 %v1103_v34, %v1071_v22  ;;  %v1040_v32 = vsub.f32 %v1000_v33, %v3536_v56  ;;  %v1160_v22 = vmin.f32 %v1156_v57, %v3802_v28 }
 0x179   : > { %v1163_v46 = vmin.f32 %v3749_v26, %v3804_v30  ;;  %v1104_v31 = vmul.f32 %v1040_v32, %v1040_v32 }
 0x17b   : > { %v1166_v54 = vmin.f32 %v1162_v8, %v1163_v46  ;;  %v3817_v56 = vadd.f32 %v1104_v31, %v1072_v19 }
 0x17d   : > { %v1164_v48 = vmin.f32 %v1160_v22, %v3817_v56 }
 0x17f   : > { %v1167_v20 = vmin.f32 %v1164_v48, %v1165_v59 }
 0x181   : > { %v1168_v1 = vmin.f32 %v1166_v54, %v1167_v20 }
 0x183   : > { %v1169_v14 = vrot.slane %v1168_v1, 4 }
 0x185   : > { %v1170_v0 = vmin.f32 %v1168_v1, %v1169_v14 }
 0x187   : > { %v1171_v4 = vrot.slane %v1170_v0, 2 }
 0x189   : > { %v1172_v41 = vmin.f32 %v1170_v0, %v1171_v4  ;;  %v1443_v4 = vld [vmem:[%s4202_s5 + $0x8] sm:$0xff] }
 0x18b   : > { %v1173_v3 = vrot.slane %v1172_v41, 1 }
 0x18d   : > { %v3821_v26 = vmin.f32 %v1172_v41, %v1173_v3  ;;  %v1444_v41 = vld [vmem:[%s4202_s5 + $0x10] sm:$0xff]  ;;  %v1445_v3 = vld [vmem:[%s4202_s5 + $0x18] sm:$0xff] }
 0x18f   : > { %vm1191_vm1 = vcmp.eq.f32.partialorder %v3654_v53, %v3821_v26  ;;  %vm1192_vm2 = vcmp.eq.f32.partialorder %v3666_v15, %v3821_v26  ;;  %vm1175_vm3 = vcmp.eq.f32.partialorder %v3576_v36, %v3821_v26  ;;  %vm1176_vm4 = vcmp.eq.f32.partialorder %v3544_v2, %v3821_v26  ;;  %v3028_v2 = vld [vmem:[%s3424_s19] ss:$8 sps:$4 sm:$0xff]  }
 0x190   : > { %vm2654_vm5 = vmpackc.low %vm1192_vm2, %vm1191_vm1  ;;  %vm1193_vm6 = vcmp.eq.f32.partialorder %v3672_v63, %v3821_v26  ;;  %vm1194_vm7 = vcmp.eq.f32.partialorder %v3777_v51, %v3821_v26  ;;  %vm1177_vm8 = vcmp.eq.f32.partialorder %v3561_v23, %v3821_v26  ;;  %vm1178_vm9 = vcmp.eq.f32.partialorder %v3624_v49, %v3821_v26  ;;  %v676_v23 = vld [vmem:[%s3424_s19 + $0x20] sm:$0x11] }
 0x191   : > { %v3242_v53 = vmov 1.0|1.0   ;;  %vm2638_vm10 = vmpackc.low %vm1176_vm4, %vm1175_vm3  ;;  %vm1195_vm11 = vcmp.eq.f32.partialorder %v3775_v40, %v3821_v26  ;;  %vm1196_vm12 = vcmp.eq.f32.partialorder %v3704_v12, %v3821_v26  ;;  %vm1179_vm13 = vcmp.eq.f32.partialorder %v3555_v17, %v3821_v26  ;;  %v3031_v17 = vld [vmem:[%s3424_s19 + $0x14] ss:$8 sps:$4 sm:$0xff]  }
 0x192   : > { %2719 = vmatprep.subr.msk.bf16.mxu0 %vm2654_vm5, %v3242_v53  ;;  %vm2656_vm14 = vmpackc.low %vm1194_vm7, %vm1193_vm6  ;;  %vm1180_vm15 = vcmp.eq.f32.partialorder %v3591_v62, %v3821_v26  ;;  %vm1181_vm1 = vcmp.eq.f32.partialorder %v3563_v24, %v3821_v26  ;;  %vm1182_vm3 = vcmp.eq.f32.partialorder %v3621_v42, %v3821_v26  ;;  %vm1200_vm4 = vcmp.eq.f32.partialorder %v3746_v18, %v3821_v26  ;;  %v3033_v24 = vld [vmem:[%s3424_s19 + $0x10] ss:$8 sps:$4 sm:$0xff]   ;;  %v1442_v62 = vld [vmem:[%s4202_s5] sm:$0xff] }
 0x193   : > { %2720 = vmatpush3.bf16.msk.msra.mxu0 %vm2638_vm10, %v3242_v53  ;;  %vm2640_vm0 = vmpackc.low %vm1178_vm9, %vm1177_vm8  ;;  %vm1183_vm5 = vcmp.eq.f32.partialorder %v3610_v7, %v3821_v26  ;;  %vm1184_vm6 = vcmp.eq.f32.partialorder %v3586_v58, %v3821_v26  ;;  %vm1199_vm8 = vcmp.eq.f32.partialorder %v3783_v43, %v3821_v26  ;;  %vm1185_vm9 = vcmp.eq.f32.partialorder %v3596_v5, %v3821_v26 }
 0x194   : > { %2721 = vmatprep.subr.msk.bf16.mxu0 %vm2656_vm14, %v3242_v53  ;;  %vm2658_vm2 = vmpackc.low %vm1196_vm12, %vm1195_vm11  ;;  %vm1186_vm10 = vcmp.eq.f32.partialorder %v3626_v38, %v3821_v26  ;;  %vm1197_vm14 = vcmp.eq.f32.partialorder %v3790_v45, %v3821_v26  ;;  %v2637_v36 = vcombine.high %v676_v23, %v676_v23  ;;  %v2636_v58 = vcombine.low %v676_v23, %v676_v23 }
 0x195   : > { %vm3857_vm7 = vmpackc.low %vm1180_vm15, %vm1179_vm13  ;;  %vm1198_vm15 = vcmp.eq.f32.partialorder %v3788_v11, %v3821_v26  ;;  %vm1190_vm13 = vcmp.eq.f32.partialorder %v3641_v10, %v3821_v26  ;;  %3036 = vrsqrt.f32 %v3821_v26  ;;  %v1376_v35 = vand.u32 2147483648, %v3821_v26 }
 0x196   : > { %vm2646_vm11 = vmpackc.low %vm1184_vm6, %vm1183_vm5  ;;  %vm4259_vm5 = vcmp.eq.f32.partialorder %v3628_v55, %v3821_v26  ;;  %vm4260_vm6 = vcmp.eq.f32.partialorder %v3639_v37, %v3821_v26  ;;  %v1383_v37 = vpop.permute.xlu1 %1382 }
 0x197   : > { %2722 = vmatpush3.bf16.msk.msra.mxu0 %vm2640_vm0, %v3242_v53  ;;  %vm2644_vm0 = vmpackc.low %vm1182_vm3, %vm1181_vm1  ;;  %vm1203_vm1 = vcmp.eq.f32.partialorder %v3792_v9, %v3821_v26 }
 0x198   : > { %2723 = vmatprep.subr.msk.bf16.mxu0 %vm2658_vm2, %v3242_v53  ;;  %vm2662_vm2 = vmpackc.low %vm1200_vm4, %vm1199_vm8  ;;  %vm4258_vm8 = vcmp.eq.f32.partialorder %v3804_v30, %v3821_v26 }
 0x199   : > { %vm2660_vm3 = vmpackc.low %vm1198_vm15, %vm1197_vm14  ;;  %vm1201_vm14 = vcmp.eq.f32.partialorder %v3802_v28, %v3821_v26 }
 0x19a   : > { %vm2648_vm4 = vmpackc.low %vm1186_vm10, %vm1185_vm9  ;;  %vm1202_vm9 = vcmp.eq.f32.partialorder %v3800_v61, %v3821_v26  ;;  %vm4261_vm10 = vcmp.eq.f32.partialorder %v3649_v25, %v3821_v26  ;;  %v1398_v12 = vpop.permute.xlu1 %1397  ;;  %v4262_v61 = vsub.s32 1, %v3512_v44 }
 0x19b   : > { %2724 = vmatpush3.bf16.msk.msra.mxu0 %vm3857_vm7, %v3242_v53  ;;  %vm2666_vm12 = vmpackc.low %vm4258_vm8, %vm1203_vm1 }
 0x19c   : > { %2725 = vmatprep.subr.msk.bf16.mxu0 %vm2660_vm3, %v3242_v53  ;;  %vm2650_vm7 = vmpackc.low %vm4260_vm6, %vm4259_vm5  ;;  %vm1616_vm5 = vcmask 261120  }
 0x19d   : > { %vm2652_vm15 = vmpackc.low %vm1190_vm13, %vm4261_vm10  ;;  %vm1375_vm13 = vcmp.eq.f32.partialorder %v3821_v26, 0.0 }
 0x19e   : > { %vm2664_vm1 = vmpackc.low %vm1202_vm9, %vm1201_vm14  ;;  %v1402_v9 = vpop.permute.xlu1 %1401 }
 0x19f   : > { %2726 = vmatpush3.bf16.msk.msra.mxu0 %vm2644_vm0, %v3242_v53  ;;  %vm1205_vm0 = vcmp.eq.f32.partialorder %v3817_v56, %v3821_v26  ;;  %v3037_v43 = vpop.eup %3036  ;;  %v1432_v59 = vpop.permute.xlu0 %1431 }
 0x1a0   : > { %2727 = vmatprep.subr.msk.bf16.mxu0 %vm2662_vm2, %v3242_v53  ;;  %vm1206_vm2 = vcmp.eq.f32.partialorder %v3811_v39, %v3821_v26  ;;  %v1372_v11 = vmul.f32 %v3037_v43, %v3821_v26 }
 0x1a1   : > { %vm2668_vm3 = vmpackc.low %vm1206_vm2, %vm1205_vm0 }
 0x1a2   : > { %v1418_v30 = vpop.permute.xlu1 %1417 }
 0x1a3   : > { %2728 = vmatpush3.bf16.msk.msra.mxu0 %vm2646_vm11, %v3242_v53  ;;  %vm1466_vm11 = vcmask 130048  }
 0x1a4   : > { %2729 = vmatprep.subr.msk.bf16.mxu0 %vm2664_vm1, %v3242_v53  ;;  %2803 = vmatprep.mubr.msk.f32.mxu1 %vm1466_vm11, %v1442_v62 }
 0x1a7   : > { %2730 = vmatpush3.bf16.msk.msra.mxu0 %vm2648_vm4, %v3242_v53 }
 0x1a8   : > { %2731 = vmatprep.subr.msk.bf16.mxu0 %vm2666_vm12, %v3242_v53  ;;  %vm1373_vm12 = vcmp.eq.f32.partialorder %v3821_v26, inf }
 0x1a9   : > { %v1374_v6 = vsel %vm1373_vm12, %v3821_v26, %v1372_v11  ;;  %v1588_v26 = vld [vmem:[%s4203_s6] sm:$0xff] }
 0x1aa   : > { %v1377_v32 = vsel %vm1375_vm13, %v1376_v35, %v1374_v6  ;;  %v1427_v56 = vpop.permute.xlu1 %1426 }
 0x1ab   : > { %2732 = vmatpush3.bf16.msk.msra.mxu0 %vm2650_vm7, %v3242_v53  ;;  %v1421_v46 = vmul.f32 %v1418_v30, %v1377_v32  ;;  %v1420_v31 = vmul.f32 %v1414_v52, %v1377_v32 }
 0x1ac   : > { %2733 = vmatprep.subr.msk.bf16.mxu0 %vm2668_vm3, %v3242_v53 }
 0x1af   : > { %2734 = vmatpush3.bf16.msk.msra.mxu0 %vm2652_vm15, %v3242_v53  ;;  %v1449_v53 = vpop.permute.xlu1 %1448 }
 0x1b2   : > { %1347 = vmatmul.mubr.bf16.vlgmr.msra.gmra.mrb[0].mxu0 %v3028_v2 }
 0x1b3   : > { %1354 = vmatprep.mubr.bf16.mxu0 %v3031_v17  ;;  %v1454_v51 = vpop.permute.xlu1 %1453 }
 0x1ba   : > { %1355 = vmatmul.mubr.bf16.gmra.mrb[4].mxu0 %v3033_v24 }
 0x1bb   : > { %1362 = vmatprep.mubr.bf16.mxu0 %v2637_v36 }
 0x1c2   : > { %1363 = vmatmul.mubr.bf16.gmra.mrb[8].mxu0 %v2636_v58  ;;  %v1464_v58 = vpop.permute.xlu1 %1463 }
 0x285   : > { %v2735_v5 = vpop.f32.mrb[0].mxu0 }
 0x286   : > { %v2736_v7 = vpop.f32.mrb[1].mxu0 }
 0x287   : > { %v3934_v42 = vadd.f32 %v2736_v7, %v2735_v5  ;;  %v2738_v49 = vpop.f32.mrb[2].mxu0  ;;  %v1459_v7 = vpop.permute.xlu0 %1458 }
 0x288   : > { %v2739_v38 = vpop.f32.mrb[3].mxu0 }
 0x289   : > { %v3937_v55 = vadd.f32 %v2739_v38, %v2738_v49 }
 0x28d   : > { %v2741_v10 = vpop.f32.mrb[4].mxu0 }
 0x28e   : > { %v2742_v25 = vpop.f32.mrb[5].mxu0 }
 0x28f   : > { %v3939_v15 = vadd.f32 %v2742_v25, %v2741_v10  ;;  %v2744_v63 = vpop.f32.mrb[6].mxu0 }
 0x290   : > { %v2745_v18 = vpop.f32.mrb[7].mxu0 }
 0x291   : > { %v3941_v40 = vadd.f32 %v2745_v18, %v2744_v63 }
 0x295   : > { %v2747_v45 = vpop.f32.mrb[8].mxu0 }
 0x296   : > { %v2748_v13 = vpop.f32.mrb[9].mxu0 }
 0x297   : > { %v2749_v16 = vadd.f32 %v2748_v13, %v2747_v45  ;;  %v2750_v27 = vpop.f32.mrb[10].mxu0 }
 0x298   : > { %v2751_v34 = vpop.f32.mrb[11].mxu0 }
 0x299   : > { %v1370_v21 = vsub.f32 %v2749_v16, %v3522_v50 }
 0x29b   : > { %v1393_v33 = vrot.slane %v1370_v21, %v844_v47  ;;  %v1407_v28 = vrot.slane %v1370_v21, %v4262_v61  ;;  %v678_v61 = vld [vmem:[%s3436_s21] sm:$0xff] }
 0x29d   : > { %v1394_v57 = vmul.f32 %v1393_v33, %v1383_v37  ;;  %v1395_v8 = vmul.f32 %v1393_v33, %v1388_v29  ;;  %v1408_v19 = vmul.f32 %v1407_v28, %v1398_v12  ;;  %v1409_v39 = vmul.f32 %v1407_v28, %v1402_v9  ;;  %v679_v28 = vld [vmem:[%s3436_s21 + $0x8] sm:$0xff] }
 0x29e   : > { %v2890_v52 = vpack.c.bf16 %v679_v28, %v678_v61 }
 0x29f   : > { %v1410_v50 = vadd.f32 %v1408_v19, %v1394_v57  ;;  %v1411_v60 = vadd.f32 %v1409_v39, %v1395_v8  ;;  %v680_v57 = vld [vmem:[%s3436_s21 + $0x10] sm:$0xff]  ;;  %v681_v8 = vld [vmem:[%s3436_s21 + $0x18] sm:$0xff]  ;;  %v1726_v19 = vld [vmem:[%s4204_s7] sm:$0xff] }
 0x2a0   : > { %v1727_v39 = vld [vmem:[%s4204_s7 + $0x8] sm:$0xff] }
 0x2a1   : > { %v1422_v22 = vadd.f32 %v1420_v31, %v1410_v50  ;;  %v1423_v54 = vadd.f32 %v1421_v46, %v1411_v60  ;;  %v1728_v46 = vld [vmem:[%s4204_s7 + $0x10] sm:$0xff]  ;;  %v1729_v31 = vld [vmem:[%s4204_s7 + $0x18] sm:$0xff]  ;;  %v1859_v50 = vld [vmem:[%s4205_s8] sm:$0xff]  ;;  %v1604_v60 = vpop.permute.xlu1 %1603 }
 0x2a3   : > { %v1434_v48 = vadd.f32 %v1427_v56, %v1422_v22  ;;  %v1435_v47 = vadd.f32 %v1432_v59, %v1423_v54  ;;  %v1599_v22 = vpop.permute.xlu0 %1598 }
 0x2a5   : > { %vm1436_vm4 = vcmp.ge.f32.partialorder %v1434_v48, 0.0  ;;  %vm1437_vm8 = vcmp.ge.f32.partialorder %v1435_v47, 0.0  ;;  %v1438_v44 = vmul.f32 0.1, %v1434_v48  ;;  %v1439_v20 = vmul.f32 0.1, %v1435_v47  ;;  %v1614_v54 = vpop.permute.xlu1 %1613 }
 0x2a7   : > { %v1440_v1 = vsel %vm1436_vm4, %v1434_v48, %v1438_v44  ;;  %v1441_v14 = vsel %vm1437_vm8, %v1435_v47, %v1439_v20  ;;  %v1609_v59 = vpop.permute.xlu0 %1608  ;;  %vm2020_vm4 = vcmask 7168  }
 0x2a8   : > { %v2878_v0 = vpack.c.bf16 %v1441_v14, %v1440_v1 }
 0x2aa   : > { %2879 = vmatprep.subr.bf16.mxu1 %v2878_v0 }
 0x2ab   : > { %2881 = vmatpush3.bf16.msra.mxu1 %v2878_v0 }
 0x2ae   : > { %2804 = vmatmul.mubr.msk.f32.vlgmr.msra.gmra.mrb[0].mxu1 %vm1466_vm11, %v1443_v4 }
 0x2af   : > { %2806 = vmatprep.mubr.msk.f32.mxu1 %vm1466_vm11, %v1444_v41 }
 0x2b2   : > { %2807 = vmatmul.mubr.msk.f32.gmra.mrb[2].mxu1 %vm1466_vm11, %v1445_v3  ;;  %v1738_v3 = vpop.permute.xlu1 %1737 }
 0x2b3   : > { %2817 = vmatprep.mubr.msk.f32.mxu1 %vm1616_vm5, %v1588_v26 }
 0x381   : > { %v2805_v2 = vpop.f32.mrb[0].mxu1 }
 0x382   : > { %v1551_v17 = vadd.f32 %v2805_v2, %v1454_v51  ;;  %v1545_v23 = vpop.f32.mrb[1].mxu1  ;;  %v1733_v51 = vpop.permute.xlu0 %1732 }
 0x383   : > { %v1546_v24 = vadd.f32 %v1545_v23, %v1449_v53 }
 0x384   : > { %v2675_v36 = vmul.f32 -1.442695, %v1551_v17 }
 0x385   : > { %v2674_v62 = vmul.f32 -1.442695, %v1546_v24  ;;  %v2808_v5 = vpop.f32.mrb[2].mxu1 }
 0x386   : > { %3038 = vpow2.f32 %v2675_v36  ;;  %v1561_v49 = vadd.f32 %v2808_v5, %v1464_v58  ;;  %v1555_v38 = vpop.f32.mrb[3].mxu1 }
 0x387   : > { %3040 = vpow2.f32 %v2674_v62  ;;  %v1556_v37 = vadd.f32 %v1555_v38, %v1459_v7 }
 0x388   : > { %v2677_v10 = vmul.f32 -1.442695, %v1561_v49 }
 0x389   : > { %v2676_v25 = vmul.f32 -1.442695, %v1556_v37  ;;  %v1748_v37 = vpop.permute.xlu1 %1747 }
 0x38a   : > { %3042 = vpow2.f32 %v2677_v10 }
 0x38b   : > { %3044 = vpow2.f32 %v2676_v25 }
 0x390   : > { %v3039_v63 = vpop.eup %3038 }
 0x391   : > { %v3041_v12 = vpop.eup %3040  ;;  %v1577_v18 = vadd.f32 1.0, %v3039_v63  ;;  %v1743_v63 = vpop.permute.xlu0 %1742 }
 0x392   : > { %v1576_v43 = vadd.f32 1.0, %v3041_v12 }
 0x393   : > { %3046 = vrcp.f32 %v1577_v18 }
 0x394   : > { %v3043_v29 = vpop.eup %3042  ;;  %3048 = vrcp.f32 %v1576_v43 }
 0x395   : > { %v3045_v11 = vpop.eup %3044  ;;  %v1579_v45 = vadd.f32 1.0, %v3043_v29 }
 0x396   : > { %v1578_v9 = vadd.f32 1.0, %v3045_v11  ;;  %v1860_v11 = vld [vmem:[%s4205_s8 + $0x8] sm:$0xff] }
 0x397   : > { %3050 = vrcp.f32 %v1579_v45 }
 0x398   : > { %3052 = vrcp.f32 %v1578_v9 }
 0x39d   : > { %v3047_v13 = vpop.eup %3046 }
 0x39e   : > { %v3049_v16 = vpop.eup %3048  ;;  %v1593_v27 = vmul.f32 %v3047_v13, %v3937_v55  ;;  %v1590_v55 = vld [vmem:[%s4203_s6 + $0x10] sm:$0xff] }
 0x39f   : > { %v1592_v34 = vmul.f32 %v3049_v16, %v3934_v42  ;;  %v1589_v42 = vld [vmem:[%s4203_s6 + $0x8] sm:$0xff]  ;;  %v1861_v13 = vld [vmem:[%s4205_s8 + $0x10] sm:$0xff] }
 0x3a1   : > { %v3051_v6 = vpop.eup %3050  ;;  %v2882_v21 = vpack.c.bf16 %v1593_v27, %v1592_v34  ;;  %v1862_v34 = vld [vmem:[%s4205_s8 + $0x18] sm:$0xff] }
 0x3a2   : > { %v3053_v35 = vpop.eup %3052  ;;  %v1595_v33 = vmul.f32 %v3051_v6, %v3941_v40  ;;  %v2894_v40 = vpack.c.bf16 %v681_v8, %v680_v57 }
 0x3a3   : > { %2883 = vmatprep.subr.bf16.mxu1 %v2882_v21  ;;  %v1594_v30 = vmul.f32 %v3053_v35, %v3939_v15  ;;  %v1591_v15 = vld [vmem:[%s4203_s6 + $0x18] sm:$0xff]  ;;  %v1866_v35 = vpop.permute.xlu0 %1865 }
 0x3a4   : > { %2885 = vmatpush3.bf16.msra.mxu1 %v2882_v21  ;;  %v1871_v21 = vpop.permute.xlu1 %1870 }
 0x3a5   : > { %v2886_v32 = vpack.c.bf16 %v1595_v33, %v1594_v30 }
 0x3a7   : > { %2887 = vmatprep.subr.bf16.mxu1 %v2886_v32 }
 0x3a8   : > { %2889 = vmatpush3.bf16.msra.mxu1 %v2886_v32 }
 0x3a9   : > { %2891 = vmatprep.subr.bf16.mxu1 %v2890_v52 }
 0x3ab   : > { %2818 = vmatmul.mubr.msk.f32.vlgmr.msra.gmra.mrb[4].mxu1 %vm1616_vm5, %v1589_v42  ;;  %v1876_v42 = vpop.permute.xlu0 %1875 }
 0x3ac   : > { %2893 = vmatpush3.bf16.msra.mxu1 %v2890_v52  ;;  %2820 = vmatprep.mubr.msk.f32.mxu1 %vm1616_vm5, %v1590_v55  ;;  %v1881_v52 = vpop.permute.xlu1 %1880 }
 0x3ad   : > { %2895 = vmatprep.subr.bf16.mxu1 %v2894_v40 }
 0x3af   : > { %2821 = vmatmul.mubr.msk.f32.gmra.mrb[6].mxu1 %vm1616_vm5, %v1591_v15 }
 0x3b0   : > { %2897 = vmatpush3.bf16.msra.mxu1 %v2894_v40  ;;  %2831 = vmatprep.mubr.msk.f32.mxu1 %vm1616_vm5, %v1726_v19 }
 0x3b3   : > { %2832 = vmatmul.mubr.msk.f32.vlgmr.msra.gmra.mrb[8].mxu1 %vm1616_vm5, %v1727_v39 }
 0x3b4   : > { %2834 = vmatprep.mubr.msk.f32.mxu1 %vm1616_vm5, %v1728_v46 }
 0x3b7   : > { %2835 = vmatmul.mubr.msk.f32.gmra.mrb[10].mxu1 %vm1616_vm5, %v1729_v31 }
 0x3b8   : > { %2845 = vmatprep.mubr.msk.f32.mxu1 %vm1616_vm5, %v1859_v50 }
 0x47e   : > { %v2819_v56 = vpop.f32.mrb[4].mxu1 }
 0x47f   : > { %v1701_v48 = vadd.f32 %v2819_v56, %v1604_v60  ;;  %v1695_v47 = vpop.f32.mrb[5].mxu1 }
 0x480   : > { %v1696_v44 = vadd.f32 %v1695_v47, %v1599_v22  ;;  %v2000_v47 = vld [vmem:[#allocation2] sm:$0xff] }
 0x481   : > { %vm1715_vm6 = vcmp.ge.f32.partialorder %v1701_v48, 0.0  ;;  %v1719_v20 = vmul.f32 0.1, %v1701_v48 }
 0x482   : > { %vm1714_vm7 = vcmp.ge.f32.partialorder %v1696_v44, 0.0  ;;  %v1718_v1 = vmul.f32 0.1, %v1696_v44  ;;  %v2822_v14 = vpop.f32.mrb[6].mxu1 }
 0x483   : > { %v1711_v0 = vadd.f32 %v2822_v14, %v1614_v54  ;;  %v1705_v4 = vpop.f32.mrb[7].mxu1  ;;  %v1723_v41 = vsel %vm1715_vm6, %v1701_v48, %v1719_v20  ;;  %v2001_v48 = vld [vmem:[#allocation2 + $0x8] sm:$0xff] }
 0x484   : > { %v1706_v26 = vadd.f32 %v1705_v4, %v1609_v59  ;;  %v1722_v53 = vsel %vm1714_vm7, %v1696_v44, %v1718_v1 }
 0x485   : > { %vm1717_vm14 = vcmp.ge.f32.partialorder %v1711_v0, 0.0  ;;  %v1721_v2 = vmul.f32 0.1, %v1711_v0  ;;  %v2898_v17 = vpack.c.bf16 %v1723_v41, %v1722_v53 }
 0x486   : > { %vm1716_vm9 = vcmp.ge.f32.partialorder %v1706_v26, 0.0  ;;  %v1720_v23 = vmul.f32 0.1, %v1706_v26  ;;  %v2833_v24 = vpop.f32.mrb[8].mxu1 }
 0x487   : > { %v1834_v36 = vadd.f32 %v2833_v24, %v1738_v3  ;;  %v1828_v58 = vpop.f32.mrb[9].mxu1  ;;  %2899 = vmatprep.subr.bf16.mxu1 %v2898_v17  ;;  %v1725_v62 = vsel %vm1717_vm14, %v1711_v0, %v1721_v2  ;;  %v2002_v0 = vld [vmem:[#allocation2 + $0x10] sm:$0xff]  ;;  %v2003_v3 = vld [vmem:[#allocation2 + $0x18] sm:$0xff] }
 0x488   : > { %v1829_v5 = vadd.f32 %v1828_v58, %v1733_v51  ;;  %2901 = vmatpush3.bf16.msra.mxu1 %v2898_v17  ;;  %v1724_v7 = vsel %vm1716_vm9, %v1706_v26, %v1720_v23 }
 0x489   : > { %vm1848_vm10 = vcmp.ge.f32.partialorder %v1834_v36, 0.0  ;;  %v1852_v49 = vmul.f32 0.1, %v1834_v36  ;;  %v2902_v38 = vpack.c.bf16 %v1725_v62, %v1724_v7  ;;  %v2037_v62 = vld [vmem:[%s4206_s9] sm:$0xff] (!%p2690_p4) }
 0x48a   : > { %v1851_v10 = vmul.f32 0.1, %v1829_v5  ;;  %v2836_v25 = vpop.f32.mrb[10].mxu1  ;;  %vm1847_vm15 = vcmp.ge.f32.partialorder %v1829_v5, 0.0  ;;  %2859 = vmatprep.mubr.msk.f32.mxu0 (!%p2690_p4), %vm1616_vm5, %v2037_v62 }
 0x48b   : > { %v1844_v12 = vadd.f32 %v2836_v25, %v1748_v37  ;;  %v1838_v18 = vpop.f32.mrb[11].mxu1  ;;  %2903 = vmatprep.subr.bf16.mxu1 %v2902_v38  ;;  %v1856_v43 = vsel %vm1848_vm10, %v1834_v36, %v1852_v49  ;;  %v2124_v37 = vld [vmem:[%s4263_s18 + $0x10] sm:$0xff] (!%p2690_p4) }
 0x48c   : > { %v1839_v29 = vadd.f32 %v1838_v18, %v1743_v63  ;;  %2905 = vmatpush3.bf16.msra.mxu1 %v2902_v38  ;;  %1993 = vst [vmem:[%s3438_s27 + $0x8] sm:$0xff] %v1856_v43  ;;  %v1855_v45 = vsel %vm1847_vm15, %v1829_v5, %v1851_v10  ;;  %v2038_v38 = vld [vmem:[%s4206_s9 + $0x8] sm:$0xff] (!%p2690_p4)  ;;  %v2122_v10 = vld [vmem:[%s4264_s24] sm:$0xff] (!%p2690_p4) }
 0x48d   : > { %v1854_v9 = vmul.f32 0.1, %v1844_v12  ;;  %1992 = vst [vmem:[%s3438_s27] sm:$0xff] %v1855_v45  ;;  %vm1850_vm1 = vcmp.ge.f32.partialorder %v1844_v12, 0.0 }
 0x48e   : > { %v1853_v16 = vmul.f32 0.1, %v1839_v29  ;;  %vm1849_vm0 = vcmp.ge.f32.partialorder %v1839_v29, 0.0 }
 0x48f   : > { %2846 = vmatmul.mubr.msk.f32.vlgmr.msra.gmra.mrb[12].mxu1 %vm1616_vm5, %v1860_v11  ;;  %v1858_v27 = vsel %vm1850_vm1, %v1844_v12, %v1854_v9  ;;  %v2123_v11 = vld [vmem:[%s4264_s24 + $0x8] sm:$0xff] (!%p2690_p4) }
 0x490   : > { %2848 = vmatprep.mubr.msk.f32.mxu1 %vm1616_vm5, %v1861_v13  ;;  %v1857_v6 = vsel %vm1849_vm0, %v1839_v29, %v1853_v16  ;;  %1995 = vst [vmem:[%s3438_s27 + $0x18] sm:$0xff] %v1858_v27  ;;  %v2125_v29 = vld [vmem:[%s4264_s24 + $0x18] sm:$0xff] (!%p2690_p4)  ;;  %v2127_v9 = vld [vmem:[%s4264_s24 + $0x28] sm:$0xff] (!%p2690_p4)  ;;  %v2128_v13 = vld [vmem:[%s4264_s24 + $0x30] sm:$0xff] (!%p2690_p4) }
 0x491   : > { %1994 = vst [vmem:[%s3438_s27 + $0x10] sm:$0xff] %v1857_v6  ;;  %v2129_v16 = vld [vmem:[%s4264_s24 + $0x38] sm:$0xff] (!%p2690_p4) }
 0x493   : > { %2849 = vmatmul.mubr.msk.f32.gmra.mrb[14].mxu1 %vm1616_vm5, %v1862_v34 }
 0x494   : > { %2869 = vmatprep.mubr.msk.f32.mxu1 (!%p2690_p4), %vm1466_vm11, %v2124_v37 }
 0x562   : > { %v2847_v33 = vpop.f32.mrb[12].mxu1 }
 0x563   : > { %v1967_v61 = vadd.f32 %v2847_v33, %v1871_v21  ;;  %v1961_v28 = vpop.f32.mrb[13].mxu1 }
 0x564   : > { %v1962_v30 = vadd.f32 %v1961_v28, %v1866_v35 }
 0x565   : > { %vm1981_vm2 = vcmp.ge.f32.partialorder %v1967_v61, 0.0  ;;  %v1985_v32 = vmul.f32 0.1, %v1967_v61 }
 0x566   : > { %v1984_v57 = vmul.f32 0.1, %v1962_v30  ;;  %v2850_v8 = vpop.f32.mrb[14].mxu1  ;;  %vm1980_vm3 = vcmp.ge.f32.partialorder %v1962_v30, 0.0 }
 0x567   : > { %v1977_v55 = vadd.f32 %v2850_v8, %v1881_v52  ;;  %v1971_v40 = vpop.f32.mrb[15].mxu1  ;;  %v1989_v15 = vsel %vm1981_vm2, %v1967_v61, %v1985_v32 }
 0x568   : > { %v1972_v19 = vadd.f32 %v1971_v40, %v1876_v42  ;;  %v2005_v39 = vadd.f32 %v1989_v15, %v1856_v43  ;;  %1997 = vst [vmem:[%s3440_s26 + $0x8] sm:$0xff] %v1989_v15  ;;  %v1988_v46 = vsel %vm1980_vm3, %v1962_v30, %v1984_v57 }
 0x569   : > { %v1987_v31 = vmul.f32 0.1, %v1977_v55  ;;  %v2004_v50 = vadd.f32 %v1988_v46, %v1855_v45  ;;  %1996 = vst [vmem:[%s3440_s26] sm:$0xff] %v1988_v46  ;;  %vm1983_vm12 = vcmp.ge.f32.partialorder %v1977_v55, 0.0  ;;  %v2126_v45 = vld [vmem:[%s4264_s24 + $0x20] sm:$0xff] (!%p2690_p4) }
 0x56a   : > { %v1986_v60 = vmul.f32 0.1, %v1972_v19  ;;  %2010 = vadd.xlane.f32.xlu1 %v2005_v39  ;;  %vm1982_vm13 = vcmp.ge.f32.partialorder %v1972_v19, 0.0 }
 0x56b   : > { %2008 = vadd.xlane.f32.xlu0 %v2004_v50  ;;  %v1991_v22 = vsel %vm1983_vm12, %v1977_v55, %v1987_v31 }
 0x56c   : > { %v1990_v54 = vsel %vm1982_vm13, %v1972_v19, %v1986_v60  ;;  %1999 = vst [vmem:[%s3440_s26 + $0x18] sm:$0xff] %v1991_v22  ;;  %v2007_v59 = vadd.f32 %v1991_v22, %v1858_v27 }
 0x56d   : > { %1998 = vst [vmem:[%s3440_s26 + $0x10] sm:$0xff] %v1990_v54  ;;  %v2006_v56 = vadd.f32 %v1990_v54, %v1857_v6 }
 0x56f   : > { %2012 = vadd.xlane.f32.xlu0 %v2006_v56 }
 0x573   : > { %2014 = vadd.xlane.f32.xlu0 %v2007_v59 }
 0x5f7   : > { %v2011_v44 = vpop.xlane.xlu1 %2010 }
 0x5f8   : > { %v2017_v20 = vadd.f32 %v2011_v44, %v2001_v48  ;;  %v2009_v1 = vpop.xlane.xlu0 %2008 }
 0x5f9   : > { %v2016_v14 = vadd.f32 %v2009_v1, %v2000_v47 }
 0x5fa   : > { %2022 = vst.msk [vmem:[#allocation2 + $0x8] sm:$0xff] %vm2020_vm4, %v2017_v20 }
 0x5fb   : > { %2021 = vst.msk [vmem:[#allocation2] sm:$0xff] %vm2020_vm4, %v2016_v14 }
 0x5fc   : > { %v2013_v4 = vpop.xlane.xlu0 %2012 }
 0x5fd   : > { %v2018_v41 = vadd.f32 %v2013_v4, %v2002_v0  ;;  %2028 = sbr.rel (%p2690_p4) target bundleno = 2058 (0x80a), region = 114 }
 0x5ff   : > { %2023 = vst.msk [vmem:[#allocation2 + $0x10] sm:$0xff] %vm2020_vm4, %v2018_v41 }
 0x600   : > { %v2015_v26 = vpop.xlane.xlu0 %2014 }
 0x601   : > { %v2019_v53 = vadd.f32 %v2015_v26, %v2003_v3  ;;  %v2030_v2 = vld [vmem:[#allocation2 + $0x8] sm:$0xff] (!%p2690_p4) }
 0x602   : > { %v2029_v51 = vld [vmem:[#allocation2] sm:$0xff] (!%p2690_p4)  ;;  %v2034_v24 = vmul.f32 (!%p2690_p4), 0.00390625, %v2030_v2 }
 0x603   : > { %2024 = vst.msk [vmem:[#allocation2 + $0x18] sm:$0xff] %vm2020_vm4, %v2019_v53  ;;  %v2033_v23 = vmul.f32 (!%p2690_p4), 0.00390625, %v2029_v51 }
 0x605   : > { %v2906_v7 = vpack.c.bf16 %v2034_v24, %v2033_v23 }
 0x606   : > { %v2031_v17 = vld [vmem:[#allocation2 + $0x10] sm:$0xff] }
 0x607   : > { %v2035_v58 = vmul.f32 0.00390625, %v2031_v17  ;;  %2907 = vmatprep.subr.bf16.mxu0 %v2906_v7 }
 0x608   : > { %2909 = vmatpush3.bf16.msra.mxu0 %v2906_v7 }
 0x60a   : > { %v2032_v36 = vld [vmem:[#allocation2 + $0x18] sm:$0xff] }
 0x60b   : > { %v2036_v5 = vmul.f32 0.00390625, %v2032_v36 }
 0x60d   : > { %v2910_v49 = vpack.c.bf16 %v2036_v5, %v2035_v58 }
 0x60f   : > { %2911 = vmatprep.subr.bf16.mxu0 %v2910_v49 }
 0x610   : > { %2913 = vmatpush3.bf16.msra.mxu0 %v2910_v49 }
 0x613   : > { %2860 = vmatmul.mubr.msk.f32.vlgmr.msra.gmra.mrb[0].mxu0 %vm1616_vm5, %v2038_v38 }
 0x614   : > { %2866 = vmatprep.mubr.msk.f32.mxu0 %vm1466_vm11, %v2122_v10 }
 0x6e6   : > { %v2861_v25 = vpop.f32.mrb[0].mxu0 }
 0x6e7   : > { %v2121_v63 = vmax.f32 %v2861_v25, 0.0  ;;  %v2111_v12 = vpop.f32.mrb[1].mxu0 }
 0x6e8   : > { %v2120_v18 = vmax.f32 %v2111_v12, 0.0 }
 0x6ea   : > { %v2914_v43 = vpack.c.bf16 %v2121_v63, %v2120_v18 }
 0x6ec   : > { %2915 = vmatprep.subr.bf16.mxu0 %v2914_v43  ;;  %2918 = vmatprep.subr.bf16.mxu1 %v2914_v43 }
 0x6ed   : > { %2917 = vmatpush3.bf16.msra.mxu0 %v2914_v43  ;;  %2919 = vmatpush3.bf16.msra.mxu1 %v2914_v43 }
 0x6f0   : > { %2870 = vmatmul.mubr.msk.f32.vlgmr.msra.gmra.mrb[0].mxu1 %vm1466_vm11, %v2125_v29  ;;  %2867 = vmatmul.mubr.msk.f32.vlgmr.msra.gmra.mrb[2].mxu0 %vm1466_vm11, %v2123_v11 }
 0x6f1   : > { %2872 = vmatprep.mubr.msk.f32.mxu1 %vm1466_vm11, %v2126_v45 }
 0x6f4   : > { %2873 = vmatmul.mubr.msk.f32.gmra.mrb[2].mxu1 %vm1466_vm11, %v2127_v9 }
 0x6f5   : > { %2875 = vmatprep.mubr.msk.f32.mxu1 %vm1466_vm11, %v2128_v13 }
 0x6f8   : > { %2876 = vmatmul.mubr.msk.f32.gmra.mrb[4].mxu1 %vm1466_vm11, %v2129_v16 }
 0x7c3   : > { %v2871_v27 = vpop.f32.mrb[0].mxu1  ;;  %v2868_v34 = vpop.f32.mrb[2].mxu0 }
 0x7c4   : > { %v2704_v6 = vmul.f32 -1.442695, %v2871_v27  ;;  %v2230_v21 = vpop.f32.mrb[1].mxu1  ;;  %v2702_v35 = vmul.f32 -1.442695, %v2868_v34  ;;  %v2220_v33 = vpop.f32.mrb[3].mxu0 }
 0x7c5   : > { %v2703_v61 = vmul.f32 -1.442695, %v2230_v21  ;;  %v2701_v28 = vmul.f32 -1.442695, %v2220_v33 }
 0x7c6   : > { %3054 = vpow2.f32 %v2704_v6 }
 0x7c7   : > { %3056 = vpow2.f32 %v2703_v61  ;;  %v2874_v30 = vpop.f32.mrb[2].mxu1 }
 0x7c8   : > { %3058 = vpow2.f32 %v2702_v35  ;;  %v2706_v32 = vmul.f32 -1.442695, %v2874_v30  ;;  %v2240_v52 = vpop.f32.mrb[3].mxu1 }
 0x7c9   : > { %3060 = vpow2.f32 %v2701_v28  ;;  %v2705_v57 = vmul.f32 -1.442695, %v2240_v52 }
 0x7ca   : > { %3062 = vpow2.f32 %v2706_v32 }
 0x7cb   : > { %3064 = vpow2.f32 %v2705_v57  ;;  %v2877_v8 = vpop.f32.mrb[4].mxu1 }
 0x7cc   : > { %v2708_v42 = vmul.f32 -1.442695, %v2877_v8  ;;  %v2250_v55 = vpop.f32.mrb[5].mxu1 }
 0x7cd   : > { %v2707_v40 = vmul.f32 -1.442695, %v2250_v55 }
 0x7ce   : > { %3066 = vpow2.f32 %v2708_v42 }
 0x7cf   : > { %3068 = vpow2.f32 %v2707_v40 }
 0x7d0   : > { %v3055_v15 = vpop.eup %3054 }
 0x7d1   : > { %v3057_v19 = vpop.eup %3056  ;;  %v2286_v54 = vadd.f32 1.0, %v3055_v15 }
 0x7d2   : > { %v3059_v39 = vpop.eup %3058  ;;  %v2285_v59 = vadd.f32 1.0, %v3057_v19 }
 0x7d3   : > { %v3061_v46 = vpop.eup %3060  ;;  %v2284_v31 = vadd.f32 1.0, %v3059_v39 }
 0x7d4   : > { %v3063_v50 = vpop.eup %3062  ;;  %v2283_v60 = vadd.f32 1.0, %v3061_v46 }
 0x7d5   : > { %v3065_v22 = vpop.eup %3064  ;;  %3070 = vrcp.f32 %v2284_v31  ;;  %v2288_v56 = vadd.f32 1.0, %v3063_v50 }
 0x7d6   : > { %3072 = vrcp.f32 %v2283_v60  ;;  %v2287_v48 = vadd.f32 1.0, %v3065_v22 }
 0x7d7   : > { %3074 = vrcp.f32 %v2288_v56 }
 0x7d8   : > { %v3067_v47 = vpop.eup %3066  ;;  %3076 = vrcp.f32 %v2287_v48 }
 0x7d9   : > { %v3069_v44 = vpop.eup %3068  ;;  %3078 = vrcp.f32 %v2286_v54  ;;  %v2290_v20 = vadd.f32 1.0, %v3067_v47 }
 0x7da   : > { %3080 = vrcp.f32 %v2285_v59  ;;  %v2289_v1 = vadd.f32 1.0, %v3069_v44 }
 0x7db   : > { %3082 = vrcp.f32 %v2290_v20 }
 0x7dc   : > { %3084 = vrcp.f32 %v2289_v1 }
 0x7df   : > { %v3071_v14 = vpop.eup %3070 }
 0x7e0   : > { %v3073_v0 = vpop.eup %3072 }
 0x7e1   : > { %v3075_v4 = vpop.eup %3074 }
 0x7e2   : > { %v3077_v41 = vpop.eup %3076  ;;  %v2308_v3 = vmax.f32 %v3071_v14, %v3075_v4 }
 0x7e3   : > { %v3079_v26 = vpop.eup %3078  ;;  %v2307_v53 = vmax.f32 %v3073_v0, %v3077_v41 }
 0x7e4   : > { %v3081_v51 = vpop.eup %3080  ;;  %v2312_v2 = vsub.f32 %v3071_v14, %v2308_v3  ;;  %v2324_v17 = vsub.f32 %v3075_v4, %v2308_v3 }
 0x7e5   : > { %v3083_v23 = vpop.eup %3082  ;;  %v2311_v24 = vsub.f32 %v3073_v0, %v2307_v53  ;;  %v2323_v36 = vsub.f32 %v3077_v41, %v2307_v53 }
 0x7e6   : > { %v3085_v58 = vpop.eup %3084  ;;  %v2317_v62 = vmul.f32 1.442695, %v2312_v2  ;;  %v2329_v5 = vmul.f32 1.442695, %v2324_v17  ;;  %v2310_v7 = vmax.f32 %v3079_v26, %v3083_v23 }
 0x7e7   : > { %v2315_v49 = vmul.f32 1.442695, %v2311_v24  ;;  %v2327_v38 = vmul.f32 1.442695, %v2323_v36  ;;  %v2309_v37 = vmax.f32 %v3081_v51, %v3085_v58 }
 0x7e8   : > { %3086 = vpow2.f32 %v2317_v62  ;;  %v2314_v10 = vsub.f32 %v3079_v26, %v2310_v7  ;;  %v2326_v25 = vsub.f32 %v3083_v23, %v2310_v7 }
 0x7e9   : > { %3088 = vpow2.f32 %v2329_v5  ;;  %v2313_v63 = vsub.f32 %v3081_v51, %v2309_v37  ;;  %v2325_v12 = vsub.f32 %v3085_v58, %v2309_v37 }
 0x7ea   : > { %3090 = vpow2.f32 %v2315_v49  ;;  %v2321_v18 = vmul.f32 1.442695, %v2314_v10  ;;  %v2333_v43 = vmul.f32 1.442695, %v2326_v25 }
 0x7eb   : > { %3092 = vpow2.f32 %v2327_v38  ;;  %v2319_v29 = vmul.f32 1.442695, %v2313_v63  ;;  %v2331_v11 = vmul.f32 1.442695, %v2325_v12 }
 0x7ec   : > { %3094 = vpow2.f32 %v2321_v18 }
 0x7ed   : > { %3096 = vpow2.f32 %v2333_v43 }
 0x7ee   : > { %3098 = vpow2.f32 %v2319_v29 }
 0x7ef   : > { %3100 = vpow2.f32 %v2331_v11 }
 0x7f2   : > { %v3087_v45 = vpop.eup %3086 }
 0x7f3   : > { %v3089_v9 = vpop.eup %3088 }
 0x7f4   : > { %v3091_v13 = vpop.eup %3090  ;;  %v2336_v16 = vadd.f32 %v3089_v9, %v3087_v45 }
 0x7f5   : > { %v3093_v27 = vpop.eup %3092 }
 0x7f6   : > { %v3095_v34 = vpop.eup %3094  ;;  %3102 = vrcp.f32 %v2336_v16  ;;  %v2335_v6 = vadd.f32 %v3093_v27, %v3091_v13 }
 0x7f7   : > { %v3097_v21 = vpop.eup %3096 }
 0x7f8   : > { %v3099_v35 = vpop.eup %3098  ;;  %3104 = vrcp.f32 %v2335_v6  ;;  %v2338_v33 = vadd.f32 %v3097_v21, %v3095_v34 }
 0x7f9   : > { %v3101_v61 = vpop.eup %3100 }
 0x7fa   : > { %3106 = vrcp.f32 %v2338_v33  ;;  %v2337_v28 = vadd.f32 %v3101_v61, %v3099_v35 }
 0x7fc   : > { %3108 = vrcp.f32 %v2337_v28 }
 0x800   : > { %v3103_v30 = vpop.eup %3102 }
 0x801   : > { %v2344_v32 = vmul.f32 %v3103_v30, %v3087_v45  ;;  %v2348_v52 = vmul.f32 %v3103_v30, %v3089_v9 }
 0x802   : > { %v3105_v57 = vpop.eup %3104 }
 0x803   : > { %2352 = vst.msk [vmem:[%s3434_s17 + $0x8] sm:$0xff] %vm2020_vm4, %v2344_v32  ;;  %2356 = vst.msk [vmem:[%s3434_s17 + $0x28] sm:$0xff] %vm2020_vm4, %v2348_v52  ;;  %v2343_v8 = vmul.f32 %v3105_v57, %v3091_v13  ;;  %v2347_v42 = vmul.f32 %v3105_v57, %v3093_v27 }
 0x804   : > { %v3107_v55 = vpop.eup %3106 }
 0x805   : > { %2351 = vst.msk [vmem:[%s3434_s17] sm:$0xff] %vm2020_vm4, %v2343_v8  ;;  %2355 = vst.msk [vmem:[%s3434_s17 + $0x20] sm:$0xff] %vm2020_vm4, %v2347_v42  ;;  %v2346_v40 = vmul.f32 %v3107_v55, %v3095_v34  ;;  %v2350_v15 = vmul.f32 %v3107_v55, %v3097_v21 }
 0x806   : > { %v3109_v19 = vpop.eup %3108 }
 0x807   : > { %2354 = vst.msk [vmem:[%s3434_s17 + $0x18] sm:$0xff] %vm2020_vm4, %v2346_v40  ;;  %2358 = vst.msk [vmem:[%s3434_s17 + $0x38] sm:$0xff] %vm2020_vm4, %v2350_v15  ;;  %v2345_v39 = vmul.f32 %v3109_v19, %v3099_v35  ;;  %v2349_v46 = vmul.f32 %v3109_v19, %v3101_v61 }
 0x809   : > { %2353 = vst.msk [vmem:[%s3434_s17 + $0x10] sm:$0xff] %vm2020_vm4, %v2345_v39  ;;  %2357 = vst.msk [vmem:[%s3434_s17 + $0x30] sm:$0xff] %vm2020_vm4, %v2349_v46 }
 0x80a PF: > { %s4265_s18 = sld [smem:[#allocation13_spill]]  ;;  %s4266_s15 = sld [smem:[#allocation22_spill]] }
 0x80b   : > { %s2384_s28 = sshll.u32 %s3438_s27, 4  ;;  %s4268_s21 = sld [smem:[#allocation27_spill]]  ;;  %s4096_s28 = int_to_ptr.vmem [resolvable:$true] %s2384_s28 }
 0x80c   : > { %s3110_s19 = scalar_lea.vmem %s4096_s28, 512 }
 0x80d   : > { %p3111_p5 = scmp.ne.s32.totalorder %s4096_s28, %s3110_s19 }
 0x80f   : > { %p3112_p6 = pnand %p3111_p5, %p3383_p8 }
 0x810   : > { %s2711_s29 = sshll.u32 %s4265_s18, 3  ;;  %s2360_s12 = scalar_lea.sflag [#allocation5], %s4266_s15 }
 0x811   : > { %s4092_s25 = sadd.s32 %s3220_s16, %s2711_s29  ;;  %p3113_p7 = pneg %p3112_p6 }
 0x812   : > { %s2712_s22 = sshll.u32 %s4092_s25, 7  ;;  %s3243_s16 = smov [#allocation4]  }
 0x813   : > { %s4103_s17 = scalar_lea.hbm %s4268_s21, %s2712_s22  ;;  %s3114_s27 = sshll.u32 %s3243_s16, 4  ;;  %s3115_s27 = int_to_ptr.vmem [resolvable:$false] %s3114_s27 }
 0x814   : > { %s3116_s3 = scalar_lea.vmem %s3115_s27, 1024  ;;  %p3117_p10 = scmp.lt.s32.totalorder %s4096_s28, %s3115_s27 }
 0x815   : > { %p3118_p11 = scmp.lt.s32.totalorder %s3116_s3, %s3110_s19 }
 0x817   : > { %p3119_p12 = por %p3118_p11, %p3117_p10 }
 0x819   : > { %p3120_p13 = pnand %p3119_p12, %p3113_p7 }
 0x81b   : > { %3123 = shalt.err (!%p3120_p13)
}
 0x81c   : > { %s3124_s10 = scalar_lea.hbm %s4103_s17, 512  ;;  %s3128_s29 = scalar_lea.hbm %s4268_s21, 2048 }
 0x81d   : > { %p3125_p0 = scmp.ne.s32.totalorder %s4103_s17, %s3124_s10  ;;  %p3129_p3 = scmp.lt.u32.totalorder %s4103_s17, %s4268_s21 }
 0x81e   : > { %p3130_p4 = scmp.lt.u32.totalorder %s3128_s29, %s3124_s10  ;;  %p3132_p6 = scmp.lt.u32.totalorder %s3124_s10, %s4103_s17 }
 0x81f   : > { %p3126_p1 = pnand %p3125_p0, %p3383_p8 }
 0x820   : > { %p3131_p5 = por %p3130_p4, %p3129_p3 }
 0x821   : > { %p3127_p2 = pneg %p3126_p1 }
 0x822   : > { %p3133_p7 = por %p3132_p6, %p3131_p5 }
 0x824   : > { %p3134_p10 = pnand %p3133_p7, %p3127_p2 }
 0x826   : > { %3137 = shalt.err (!%p3134_p10)
}
 0x827   : > { %s3244_s19 = smov 128   ;;  %s3245_s16 = smov 256  }
 0x828   : > { %s3246_s27 = smov 8   ;;  %s4269_s30 = sld [smem:[#allocation28_spill]] }
 0x829   : > { %2921 = dma.vmem_to_hbm [thread:$0]  (%p3383_p8), %s4096_s28, 512, %s4103_s17, %s2360_s12, %s3244_s19, %s3245_s16, %s3246_s27  }
 0x82a   : > { %s2401_s29 = sshll.u32 %s3440_s26, 4  ;;  %s2365_s13 = scalar_lea.sflag [#allocation7], %s4266_s15  ;;  %s4140_s29 = int_to_ptr.vmem [resolvable:$true] %s2401_s29 }
 0x82b   : > { %s3138_s0 = scalar_lea.vmem %s4140_s29, 512  ;;  %s3247_s1 = smov [#allocation6]  }
 0x82c   : > { %p3139_p11 = scmp.ne.s32.totalorder %s4140_s29, %s3138_s0  ;;  %s3142_s28 = sshll.u32 %s3247_s1, 4  ;;  %s3143_s28 = int_to_ptr.vmem [resolvable:$false] %s3142_s28 }
 0x82d   : > { %s3144_s25 = scalar_lea.vmem %s3143_s28, 1024  ;;  %p3145_p0 = scmp.lt.s32.totalorder %s4140_s29, %s3143_s28 }
 0x82e   : > { %s4270_s23 = smov %s4269_s30  ;;  %s4137_s18 = scalar_lea.hbm %s4269_s30, %s2712_s22 }
 0x82f   : > { %p3140_p12 = pnand %p3139_p11, %p3383_p8  ;;  %p3146_p1 = scmp.lt.s32.totalorder %s3144_s25, %s3138_s0 }
 0x831   : > { %p3141_p13 = pneg %p3140_p12  ;;  %p3147_p2 = por %p3146_p1, %p3145_p0 }
 0x833   : > { %p3148_p3 = pnand %p3147_p2, %p3141_p13 }
 0x835   : > { %3151 = shalt.err (!%p3148_p3)
}
 0x836   : > { %s3152_s26 = scalar_lea.hbm %s4137_s18, 512  ;;  %s3156_s1 = scalar_lea.hbm %s4270_s23, 2048 }
 0x837   : > { %p3153_p4 = scmp.ne.s32.totalorder %s4137_s18, %s3152_s26  ;;  %p3157_p7 = scmp.lt.u32.totalorder %s4137_s18, %s4270_s23 }
 0x838   : > { %p3158_p10 = scmp.lt.u32.totalorder %s3156_s1, %s3152_s26  ;;  %p3160_p12 = scmp.lt.u32.totalorder %s3152_s26, %s4137_s18 }
 0x839   : > { %p3154_p5 = pnand %p3153_p4, %p3383_p8 }
 0x83a   : > { %p3159_p11 = por %p3158_p10, %p3157_p7 }
 0x83b   : > { %p3155_p6 = pneg %p3154_p5 }
 0x83c   : > { %p3161_p13 = por %p3160_p12, %p3159_p11 }
 0x83e   : > { %p3162_p0 = pnand %p3161_p13, %p3155_p6 }
 0x840   : > { %3165 = shalt.err (!%p3162_p0)
}
 0x841   : > { %2922 = dma.vmem_to_hbm [thread:$0]  (%p3383_p8), %s4140_s29, 512, %s4137_s18, %s2365_s13, %s3244_s19, %s3245_s16, %s3246_s27  }
 0x842 PF: > { %s4271_s0 = sld [smem:[#allocation16_spill]]  ;;  %s4272_s10 = sld [smem:[#allocation10_spill]] }
 0x848   : > { %p2932_p1 = scmp.ge.s32.totalorder %s4271_s0, 2  ;;  %s2419_s28 = sand.u32 1, %s4272_s10  }
 0x849   : > { %s2420_s25 = scalar_lea.sflag [#allocation5], %s2419_s28 }
 0x84a   : > { %p2926_p2 = pnand %p2932_p1, %p3387_p9 }
 0x84c   : > { %3199 = dma.done.wait (!%p2926_p2), %s2420_s25, 512  }
 0x84d   : > { %3201 = vsyncadd (!%p2926_p2), %s2420_s25, 4294966784  ;;  %s2429_s20 = scalar_lea.sflag [#allocation7], %s2419_s28 }
 0x84e   : > { %3203 = dma.done.wait (!%p2926_p2), %s2429_s20, 512  }
 0x84f   : > { %3205 = vsyncadd (!%p2926_p2), %s2429_s20, 4294966784  ;;  %s31_s20 = sadd.s32 1, %s4271_s0   ;;  %s4274_s29 = sld [smem:[#allocation11_spill]] }
 0x850   : > { %p28_p3 = scmp.ge.s32.totalorder %s31_s20, 6   ;;  %s4275_s30 = sld [smem:[#allocation12_spill]] }
 0x851   : > { %s4276_s15 = sld [smem:[#allocation21_spill]]  ;;  %s4277_s16 = sld [smem:[#allocation14_spill]] }
 0x852   : > { %s4278_s17 = sld [smem:[#allocation15_spill]]  ;;  %s4279_s18 = sld [smem:[#allocation17_spill]] }
 0x853   : > { %s4280_s19 = sld [smem:[#allocation18_spill]]  ;;  %30 = sbr.rel (!%p28_p3) target bundleno = 14 (0xe), region = 192 }
 0x85a   :  { %2442 = vsyncpa [#allocation5], 1 }
 0x85b   :  { %2444 = vsyncpa [#allocation5 + $0x1], 1 }
 0x85c   :  { %2445 = vsyncpa [#allocation7], 1 }
 0x85d   :  { %2447 = vsyncpa [#allocation7 + $0x1], 1 }

</bundles_post_ra>
